<compile_context>
chip_gen: v7x
topology: tpu7x:2x2x1
jax: 0.10.0
libtpu: 0.0.40
codegen_flags: <defaults>
</compile_context>

<pallas_src>
import functools

import jax
import jax.numpy as jnp
import numpy as np
from jax.experimental import pallas as pl
from jax.experimental.pallas import tpu as pltpu

EPS = 1e-5
LANE = 128


# ----------------------------- Pallas kernel -------------------------------- #

def _make_kernel(ho, wo, ws):
    """Fused residual-block kernel for one batch element (whole image tile)."""
    m = ho * wo

    def kernel(p1_ref, w1_ref, b1_ref, w2_ref, b2_ref, wsc_ref, bsc_ref,
               o_ref, y1_ref):
        cop = o_ref.shape[-1]
        dt = y1_ref.dtype

        # ---- zero ONLY the conv2 halo slabs (interior is rewritten below).
        # Done every grid step (not @pl.when(program_id==0)) so results stay
        # correct if the parallel batch axis is sharded across TensorCores,
        # where a core may never execute step 0 of its private scratch.
        y1_ref[0:1, :, :] = jnp.zeros((1, ws, cop), dt)                 # top row
        y1_ref[1 + ho:2 + ho, :, :] = jnp.zeros((1, ws, cop), dt)       # bottom row
        y1_ref[1:1 + ho, 0:8, :] = jnp.zeros((ho, 8, cop), dt)          # left cols
        y1_ref[1:1 + ho, 8 + wo:ws, :] = jnp.zeros((ho, ws - 8 - wo, cop), dt)

        p1 = p1_ref[...]                                  # (m, kp) bf16, read once

        # ---- conv1 (3x3, BN1 scale folded) + bias + ReLU: ONE packed matmul.
        y1 = jnp.dot(p1, w1_ref[...], preferred_element_type=jnp.float32)
        y1 = jnp.maximum(y1 + b1_ref[...], 0.0)           # (m, cop) f32

        # Stage y1 in VMEM with a sublane-ALIGNED interior (offset 8, width wo);
        # y1 never round-trips HBM.
        y1_ref[1:1 + ho, 8:8 + wo, :] = y1.reshape(ho, wo, cop).astype(dt)

        # ---- shortcut (projection or identity, both as a K-packed matmul on
        #      the same conv1 patches) + both folded BN biases.
        acc = jnp.dot(p1, wsc_ref[...], preferred_element_type=jnp.float32)
        acc = acc + b2_ref[...] + bsc_ref[...]

        # ---- conv2 (3x3, stride 1, BN2 scale folded): 9 accumulating matmuls
        #      over shifted views of the halo'd y1 scratch.
        # TODO(synk): derive the j=0/2 taps from the aligned j=1 read with
        #             pltpu.roll to drop the two misaligned sublane loads.
        for i in range(3):
            for j in range(3):
                patch = y1_ref[i:i + ho, 7 + j:7 + j + wo, :]           # (ho, wo, cop)
                acc = acc + jnp.dot(patch.reshape(m, cop), w2_ref[i * 3 + j],
                                    preferred_element_type=jnp.float32)

        # ---- residual already included; final ReLU; bf16 output (half writeback).
        o_ref[...] = jnp.maximum(acc, 0.0).astype(o_ref.dtype)

    return kernel


# ----------------------------- Pallas wrapper -------------------------------- #

def _fused_residual_block(p1, w1, b1, w2, b2, wsc, bsc, *, ho, wo, ws):
    n, m, kp = p1.shape
    cop = w1.shape[-1]
    kernel = _make_kernel(ho, wo, ws)

    return pl.pallas_call(
        kernel,
        out_shape=jax.ShapeDtypeStruct((n, m, cop), jnp.bfloat16),
        grid=(n,),
        in_specs=[
            pl.BlockSpec((None, m, kp), lambda b: (b, 0, 0)),      # packed patches
            pl.BlockSpec((kp, cop), lambda b: (0, 0)),             # w1 (K-packed)
            pl.BlockSpec((1, cop), lambda b: (0, 0)),              # b1
            pl.BlockSpec((9, cop, cop), lambda b: (0, 0, 0)),      # w2 (per tap)
            pl.BlockSpec((1, cop), lambda b: (0, 0)),              # b2
            pl.BlockSpec((kp, cop), lambda b: (0, 0)),             # shortcut weight
            pl.BlockSpec((1, cop), lambda b: (0, 0)),              # shortcut bias
        ],
        out_specs=pl.BlockSpec((None, m, cop), lambda b: (b, 0, 0)),
        scratch_shapes=[pltpu.VMEM((ho + 2, ws, cop), jnp.bfloat16)],
        compiler_params=pltpu.CompilerParams(
            dimension_semantics=("parallel",),          # batch shards across TCs
            vmem_limit_bytes=48 * 1024 * 1024,          # headroom, < v7x 64 MiB
        ),
    )(p1, w1, b1, w2, b2, wsc, bsc)


# ------------------------------ JAX glue ------------------------------------- #

def _round_up(x, mult):
    return (x + mult - 1) // mult * mult


def _fold_bn(bn):
    gamma, beta, mean, var = bn
    scale = gamma / jnp.sqrt(var + EPS)
    return scale, beta - mean * scale


def _prep_bias(bias, cop):
    return jnp.pad(bias, (0, cop - bias.shape[0])).reshape(1, -1).astype(jnp.float32)


def residual_block_forward(x_nchw, params, in_channels, out_channels):
    """Pallas implementation of ResidualBlock.forward.  Input/output are NCHW f32."""
    stride = 1 if in_channels == out_channels else 2
    n, cin, h, w = x_nchw.shape
    assert cin == in_channels
    ho = (h + 2 - 3) // stride + 1
    wo = (w + 2 - 3) // stride + 1
    m = ho * wo
    kp = _round_up(max(9 * cin, LANE), LANE)             # packed contraction dim
    cop = _round_up(max(out_channels, LANE), LANE)       # lane-dense out channels
    ws = 8 + _round_up(wo + 1, 8)                        # y1 scratch width (halo'd)

    # bf16 BEFORE any relayout (halves wrapper-side relayout traffic).
    # TODO(synk): when chaining blocks, keep activations NHWC/bf16/lane-padded
    #             between blocks so these transposes/slices disappear.
    x = jnp.transpose(x_nchw.astype(jnp.bfloat16), (0, 2, 3, 1))   # NHWC
    x = jnp.pad(x, ((0, 0), (1, 1), (1, 1), (0, 0)))               # 3x3 halo

    # Packed 3x3 im2col: the 9 taps go into the (lane-dense) contraction dim,
    # so conv1 and the shortcut become single matmuls with near-full K.
    taps = []
    for i in range(3):
        for j in range(3):
            taps.append(x[:, i:i + (ho - 1) * stride + 1:stride,
                            j:j + (wo - 1) * stride + 1:stride, :])   # (n, ho, wo, cin)
    p1 = jnp.concatenate(taps, axis=-1).reshape(n, m, 9 * cin)
    p1 = jnp.pad(p1, ((0, 0), (0, 0), (0, kp - 9 * cin)))            # bf16 (n, m, kp)

    # BN scales folded into the conv weights, biases applied in the epilogue.
    s1, b1 = _fold_bn(params["bn1"])
    s2, b2 = _fold_bn(params["bn2"])

    w1 = jnp.transpose(params["w1"], (2, 3, 1, 0)) * s1              # (3,3,cin,cout)
    w1 = w1.reshape(9 * cin, out_channels)
    w1 = jnp.pad(w1, ((0, kp - 9 * cin), (0, cop - out_channels))).astype(jnp.bfloat16)

    w2 = jnp.transpose(params["w2"], (2, 3, 1, 0)) * s2              # (3,3,cout,cout)
    w2 = w2.reshape(9, out_channels, out_channels)
    w2 = jnp.pad(w2, ((0, 0), (0, cop - out_channels),
                      (0, cop - out_channels))).astype(jnp.bfloat16)

    b1p = _prep_bias(b1, cop)
    b2p = _prep_bias(b2, cop)

    # Shortcut as a K-packed (kp, cop) matmul on the SAME conv1 patches:
    # rows [4*cin, 5*cin) are the centre tap, i.e. x[s*oh, s*ow, :].
    if in_channels != out_channels:
        ssc, bsc = _fold_bn(params["bnsc"])
        wsc_core = params["wsc"][:, :, 0, 0].T * ssc                 # (cin, cout)
        bscp = _prep_bias(bsc, cop)
    else:
        wsc_core = jnp.eye(cin, dtype=jnp.float32)                   # identity shortcut
        bscp = jnp.zeros((1, cop), jnp.float32)
    wsc = jnp.zeros((kp, cop), jnp.float32)
    wsc = wsc.at[4 * cin:5 * cin, :out_channels].set(wsc_core).astype(jnp.bfloat16)

    out = _fused_residual_block(p1, w1, b1p, w2, b2p, wsc, bscp,
                                ho=ho, wo=wo, ws=ws)                 # (n, m, cop) bf16
    out = out.reshape(n, ho, wo, cop)[..., :out_channels].astype(jnp.float32)
    return jnp.transpose(out, (0, 3, 1, 2))                          # back to NCHW


# ------------------------------ params / reference --------------------------- #

def init_params(key, in_channels, out_channels):
    ks = jax.random.split(key, 6)

    def bn_params(k, c):
        k1, k2, k3, k4 = jax.random.split(k, 4)
        gamma = 1.0 + 0.1 * jax.random.normal(k1, (c,), jnp.float32)
        beta = 0.05 * jax.random.normal(k2, (c,), jnp.float32)
        mean = 0.02 * jax.random.normal(k3, (c,), jnp.float32)
        var = jax.random.uniform(k4, (c,), jnp.float32, 0.5, 1.5)
        return gamma, beta, mean, var

    p = {
        "w1": 0.1 * jax.random.normal(ks[0], (out_channels, in_channels, 3, 3), jnp.float32),
        "bn1": bn_params(ks[1], out_channels),
        "w2": 0.1 * jax.random.normal(ks[2], (out_channels, out_channels, 3, 3), jnp.float32),
        "bn2": bn_params(ks[3], out_channels),
    }
    if in_channels != out_channels:
        p["wsc"] = 0.1 * jax.random.normal(ks[4], (out_channels, in_channels, 1, 1), jnp.float32)
        p["bnsc"] = bn_params(ks[5], out_channels)
    return p


def reference_forward(x, p, in_channels, out_channels):
    """Pure-JAX (XLA conv, f32) reference of the same inference-mode forward."""
    stride = 1 if in_channels == out_channels else 2

    def conv(x_, w_, s_, pad_):
        return jax.lax.conv_general_dilated(
            x_, w_, (s_, s_), [(pad_, pad_), (pad_, pad_)],
            dimension_numbers=("NCHW", "OIHW", "NCHW"))

    def bn(x_, bnp):
        g, b, mu, v = (t[None, :, None, None] for t in bnp)
        return (x_ - mu) / jnp.sqrt(v + EPS) * g + b

    out = jax.nn.relu(bn(conv(x, p["w1"], stride, 1), p["bn1"]))
    out = bn(conv(out, p["w2"], 1, 1), p["bn2"])
    if in_channels != out_channels:
        sc = bn(conv(x, p["wsc"], stride, 0), p["bnsc"])
    else:
        sc = x
    return jax.nn.relu(out + sc)


# ----------------------------------- main ------------------------------------ #

if __name__ == "__main__":
    key = jax.random.PRNGKey(0)
    k_x1, k_p1, k_x2, k_p2 = jax.random.split(key, 4)

    # Tolerances are bf16-level (bf16 operands + bf16 output vs f32 XLA reference).
    RTOL = ATOL = 4e-2

    # Case 1: in_channels != out_channels -> stride 2, 1x1-conv projection shortcut.
    in_c, out_c = 4, 8
    x1 = jax.random.normal(k_x1, (2, in_c, 16, 16), jnp.float32)      # NCHW
    prm1 = init_params(k_p1, in_c, out_c)
    fwd1 = jax.jit(functools.partial(residual_block_forward,
                                     in_channels=in_c, out_channels=out_c))
    y1 = jax.block_until_ready(fwd1(x1, prm1))
    ref1 = reference_forward(x1, prm1, in_c, out_c)
    np.testing.assert_allclose(np.asarray(y1), np.asarray(ref1), rtol=RTOL, atol=ATOL)
    assert y1.shape == (2, out_c, 8, 8)

    # Case 2: in_channels == out_channels -> stride 1, identity shortcut.
    in_c2 = out_c2 = 4
    x2 = jax.random.normal(k_x2, (2, in_c2, 16, 16), jnp.float32)     # NCHW
    prm2 = init_params(k_p2, in_c2, out_c2)
    fwd2 = jax.jit(functools.partial(residual_block_forward,
                                     in_channels=in_c2, out_channels=out_c2))
    y2 = jax.block_until_ready(fwd2(x2, prm2))
    ref2 = reference_forward(x2, prm2, in_c2, out_c2)
    np.testing.assert_allclose(np.asarray(y2), np.asarray(ref2), rtol=RTOL, atol=ATOL)
    assert y2.shape == (2, out_c2, 16, 16)

    print("KERNEL_OK")
</pallas_src>

<mosaic_0001>
module attributes {stable_mosaic.version = 11 : i64} {
  func.func @kernel(%arg0: i32, %arg1: memref<1x64x128xbf16, #tpu.memory_space<vmem>>, %arg2: memref<128x128xbf16, #tpu.memory_space<vmem>>, %arg3: memref<1x128xf32, #tpu.memory_space<vmem>>, %arg4: memref<9x128x128xbf16, #tpu.memory_space<vmem>>, %arg5: memref<1x128xf32, #tpu.memory_space<vmem>>, %arg6: memref<128x128xbf16, #tpu.memory_space<vmem>>, %arg7: memref<1x128xf32, #tpu.memory_space<vmem>>, %arg8: memref<1x64x128xbf16, #tpu.memory_space<vmem>>, %arg9: memref<10x24x128xbf16, #tpu.memory_space<vmem>>) attributes {dimension_semantics = [#tpu.dimension_semantics<parallel>], iteration_bounds = array<i64: 2>, scalar_prefetch = 0 : i64, scratch_operands = 1 : i64, tpu.core_type = #tpu.core_type<tc>, window_params = [{transform_indices = @transform_0, window_bounds = array<i64: 1, 64, 128>}, {pipeline_mode = #tpu.pipeline_mode<synchronous>, transform_indices = @transform_1, window_bounds = array<i64: 128, 128>}, {pipeline_mode = #tpu.pipeline_mode<synchronous>, transform_indices = @transform_2, window_bounds = array<i64: 1, 128>}, {pipeline_mode = #tpu.pipeline_mode<synchronous>, transform_indices = @transform_3, window_bounds = array<i64: 9, 128, 128>}, {pipeline_mode = #tpu.pipeline_mode<synchronous>, transform_indices = @transform_4, window_bounds = array<i64: 1, 128>}, {pipeline_mode = #tpu.pipeline_mode<synchronous>, transform_indices = @transform_5, window_bounds = array<i64: 128, 128>}, {pipeline_mode = #tpu.pipeline_mode<synchronous>, transform_indices = @transform_6, window_bounds = array<i64: 1, 128>}, {transform_indices = @transform_7, window_bounds = array<i64: 1, 64, 128>}]} {
    %cst = arith.constant 0.000000e+00 : bf16
    %0 = vector.broadcast %cst : bf16 to vector<1x24x128xbf16>
    %c0 = arith.constant 0 : index
    %c0_0 = arith.constant 0 : index
    %c0_1 = arith.constant 0 : index
    %1 = vector.load %arg9[%c0, %c0_0, %c0_1] : memref<10x24x128xbf16, #tpu.memory_space<vmem>>, vector<1x24x128xbf16>
    tpu.vector_store %arg9[%c0, %c0_0, %c0_1], %0 {strides = array<i32>} : memref<10x24x128xbf16, #tpu.memory_space<vmem>>, vector<1x24x128xbf16>,
    %cst_2 = arith.constant 0.000000e+00 : bf16
    %2 = vector.broadcast %cst_2 : bf16 to vector<1x24x128xbf16>
    %c9 = arith.constant 9 : index
    %c0_3 = arith.constant 0 : index
    %c0_4 = arith.constant 0 : index
    %3 = vector.load %arg9[%c9, %c0_3, %c0_4] : memref<10x24x128xbf16, #tpu.memory_space<vmem>>, vector<1x24x128xbf16>
    tpu.vector_store %arg9[%c9, %c0_3, %c0_4], %2 {strides = array<i32>} : memref<10x24x128xbf16, #tpu.memory_space<vmem>>, vector<1x24x128xbf16>,
    %cst_5 = arith.constant 0.000000e+00 : bf16
    %4 = vector.broadcast %cst_5 : bf16 to vector<8x8x128xbf16>
    %c1 = arith.constant 1 : index
    %c0_6 = arith.constant 0 : index
    %c0_7 = arith.constant 0 : index
    %5 = vector.load %arg9[%c1, %c0_6, %c0_7] : memref<10x24x128xbf16, #tpu.memory_space<vmem>>, vector<8x8x128xbf16>
    tpu.vector_store %arg9[%c1, %c0_6, %c0_7], %4 {strides = array<i32>} : memref<10x24x128xbf16, #tpu.memory_space<vmem>>, vector<8x8x128xbf16>,
    %cst_8 = arith.constant 0.000000e+00 : bf16
    %6 = vector.broadcast %cst_8 : bf16 to vector<8x8x128xbf16>
    %c1_9 = arith.constant 1 : index
    %c16 = arith.constant 16 : index
    %c0_10 = arith.constant 0 : index
    %7 = vector.load %arg9[%c1_9, %c16, %c0_10] : memref<10x24x128xbf16, #tpu.memory_space<vmem>>, vector<8x8x128xbf16>
    tpu.vector_store %arg9[%c1_9, %c16, %c0_10], %6 {strides = array<i32>} : memref<10x24x128xbf16, #tpu.memory_space<vmem>>, vector<8x8x128xbf16>,
    %c0_11 = arith.constant 0 : index
    %c0_12 = arith.constant 0 : index
    %c0_13 = arith.constant 0 : index
    %8 = vector.load %arg1[%c0_11, %c0_12, %c0_13] : memref<1x64x128xbf16, #tpu.memory_space<vmem>>, vector<1x64x128xbf16>
    %9 = vector.shape_cast %8 : vector<1x64x128xbf16> to vector<64x128xbf16>
    %c0_14 = arith.constant 0 : index
    %c0_15 = arith.constant 0 : index
    %10 = vector.load %arg2[%c0_14, %c0_15] : memref<128x128xbf16, #tpu.memory_space<vmem>>, vector<128x128xbf16>
    %cst_16 = arith.constant dense<0.000000e+00> : vector<64x128xf32>
    %11 = tpu.matmul %9, %10, %cst_16 {dimension_numbers = #tpu.dot_dimension_numbers<[1], [0], [0], [1], [0, 0, 1, 1], [], []>} : vector<64x128xbf16>, vector<128x128xbf16>, vector<64x128xf32> -> vector<64x128xf32>
    %c0_17 = arith.constant 0 : index
    %c0_18 = arith.constant 0 : index
    %12 = vector.load %arg3[%c0_17, %c0_18] : memref<1x128xf32, #tpu.memory_space<vmem>>, vector<1x128xf32>
    %13 = vector.broadcast %12 : vector<1x128xf32> to vector<64x128xf32>
    %14 = arith.addf %11, %13 : vector<64x128xf32>
    %cst_19 = arith.constant 0.000000e+00 : f32
    %15 = vector.broadcast %cst_19 : f32 to vector<64x128xf32>
    %16 = arith.maximumf %14, %15 : vector<64x128xf32>
    %17 = vector.shape_cast %16 : vector<64x128xf32> to vector<8x8x128xf32>
    %18 = arith.truncf %17 : vector<8x8x128xf32> to vector<8x8x128xbf16>
    %c1_20 = arith.constant 1 : index
    %c8 = arith.constant 8 : index
    %c0_21 = arith.constant 0 : index
    %19 = vector.load %arg9[%c1_20, %c8, %c0_21] : memref<10x24x128xbf16, #tpu.memory_space<vmem>>, vector<8x8x128xbf16>
    tpu.vector_store %arg9[%c1_20, %c8, %c0_21], %18 {strides = array<i32>} : memref<10x24x128xbf16, #tpu.memory_space<vmem>>, vector<8x8x128xbf16>,
    %c0_22 = arith.constant 0 : index
    %c0_23 = arith.constant 0 : index
    %20 = vector.load %arg6[%c0_22, %c0_23] : memref<128x128xbf16, #tpu.memory_space<vmem>>, vector<128x128xbf16>
    %cst_24 = arith.constant dense<0.000000e+00> : vector<64x128xf32>
    %21 = tpu.matmul %9, %20, %cst_24 {dimension_numbers = #tpu.dot_dimension_numbers<[1], [0], [0], [1], [0, 0, 1, 1], [], []>} : vector<64x128xbf16>, vector<128x128xbf16>, vector<64x128xf32> -> vector<64x128xf32>
    %c0_25 = arith.constant 0 : index
    %c0_26 = arith.constant 0 : index
    %22 = vector.load %arg5[%c0_25, %c0_26] : memref<1x128xf32, #tpu.memory_space<vmem>>, vector<1x128xf32>
    %23 = vector.broadcast %22 : vector<1x128xf32> to vector<64x128xf32>
    %24 = arith.addf %21, %23 : vector<64x128xf32>
    %c0_27 = arith.constant 0 : index
    %c0_28 = arith.constant 0 : index
    %25 = vector.load %arg7[%c0_27, %c0_28] : memref<1x128xf32, #tpu.memory_space<vmem>>, vector<1x128xf32>
    %26 = vector.broadcast %25 : vector<1x128xf32> to vector<64x128xf32>
    %27 = arith.addf %24, %26 : vector<64x128xf32>
    %c0_29 = arith.constant 0 : index
    %c7 = arith.constant 7 : index
    %c0_30 = arith.constant 0 : index
    %28 = vector.load %arg9[%c0_29, %c7, %c0_30] : memref<10x24x128xbf16, #tpu.memory_space<vmem>>, vector<8x8x128xbf16>
    %29 = vector.shape_cast %28 : vector<8x8x128xbf16> to vector<64x128xbf16>
    %c0_31 = arith.constant 0 : index
    %c0_32 = arith.constant 0 : index
    %c0_33 = arith.constant 0 : index
    %30 = vector.load %arg4[%c0_31, %c0_32, %c0_33] : memref<9x128x128xbf16, #tpu.memory_space<vmem>>, vector<1x128x128xbf16>
    %31 = vector.shape_cast %30 : vector<1x128x128xbf16> to vector<128x128xbf16>
    %cst_34 = arith.constant dense<0.000000e+00> : vector<64x128xf32>
    %32 = tpu.matmul %29, %31, %cst_34 {dimension_numbers = #tpu.dot_dimension_numbers<[1], [0], [0], [1], [0, 0, 1, 1], [], []>} : vector<64x128xbf16>, vector<128x128xbf16>, vector<64x128xf32> -> vector<64x128xf32>
    %33 = arith.addf %27, %32 : vector<64x128xf32>
    %c0_35 = arith.constant 0 : index
    %c8_36 = arith.constant 8 : index
    %c0_37 = arith.constant 0 : index
    %34 = vector.load %arg9[%c0_35, %c8_36, %c0_37] : memref<10x24x128xbf16, #tpu.memory_space<vmem>>, vector<8x8x128xbf16>
    %35 = vector.shape_cast %34 : vector<8x8x128xbf16> to vector<64x128xbf16>
    %c1_38 = arith.constant 1 : index
    %c0_39 = arith.constant 0 : index
    %c0_40 = arith.constant 0 : index
    %36 = vector.load %arg4[%c1_38, %c0_39, %c0_40] : memref<9x128x128xbf16, #tpu.memory_space<vmem>>, vector<1x128x128xbf16>
    %37 = vector.shape_cast %36 : vector<1x128x128xbf16> to vector<128x128xbf16>
    %cst_41 = arith.constant dense<0.000000e+00> : vector<64x128xf32>
    %38 = tpu.matmul %35, %37, %cst_41 {dimension_numbers = #tpu.dot_dimension_numbers<[1], [0], [0], [1], [0, 0, 1, 1], [], []>} : vector<64x128xbf16>, vector<128x128xbf16>, vector<64x128xf32> -> vector<64x128xf32>
    %39 = arith.addf %33, %38 : vector<64x128xf32>
    %c0_42 = arith.constant 0 : index
    %c9_43 = arith.constant 9 : index
    %c0_44 = arith.constant 0 : index
    %40 = vector.load %arg9[%c0_42, %c9_43, %c0_44] : memref<10x24x128xbf16, #tpu.memory_space<vmem>>, vector<8x8x128xbf16>
    %41 = vector.shape_cast %40 : vector<8x8x128xbf16> to vector<64x128xbf16>
    %c2 = arith.constant 2 : index
    %c0_45 = arith.constant 0 : index
    %c0_46 = arith.constant 0 : index
    %42 = vector.load %arg4[%c2, %c0_45, %c0_46] : memref<9x128x128xbf16, #tpu.memory_space<vmem>>, vector<1x128x128xbf16>
    %43 = vector.shape_cast %42 : vector<1x128x128xbf16> to vector<128x128xbf16>
    %cst_47 = arith.constant dense<0.000000e+00> : vector<64x128xf32>
    %44 = tpu.matmul %41, %43, %cst_47 {dimension_numbers = #tpu.dot_dimension_numbers<[1], [0], [0], [1], [0, 0, 1, 1], [], []>} : vector<64x128xbf16>, vector<128x128xbf16>, vector<64x128xf32> -> vector<64x128xf32>
    %45 = arith.addf %39, %44 : vector<64x128xf32>
    %c1_48 = arith.constant 1 : index
    %c7_49 = arith.constant 7 : index
    %c0_50 = arith.constant 0 : index
    %46 = vector.load %arg9[%c1_48, %c7_49, %c0_50] : memref<10x24x128xbf16, #tpu.memory_space<vmem>>, vector<8x8x128xbf16>
    %47 = vector.shape_cast %46 : vector<8x8x128xbf16> to vector<64x128xbf16>
    %c3 = arith.constant 3 : index
    %c0_51 = arith.constant 0 : index
    %c0_52 = arith.constant 0 : index
    %48 = vector.load %arg4[%c3, %c0_51, %c0_52] : memref<9x128x128xbf16, #tpu.memory_space<vmem>>, vector<1x128x128xbf16>
    %49 = vector.shape_cast %48 : vector<1x128x128xbf16> to vector<128x128xbf16>
    %cst_53 = arith.constant dense<0.000000e+00> : vector<64x128xf32>
    %50 = tpu.matmul %47, %49, %cst_53 {dimension_numbers = #tpu.dot_dimension_numbers<[1], [0], [0], [1], [0, 0, 1, 1], [], []>} : vector<64x128xbf16>, vector<128x128xbf16>, vector<64x128xf32> -> vector<64x128xf32>
    %51 = arith.addf %45, %50 : vector<64x128xf32>
    %c1_54 = arith.constant 1 : index
    %c8_55 = arith.constant 8 : index
    %c0_56 = arith.constant 0 : index
    %52 = vector.load %arg9[%c1_54, %c8_55, %c0_56] : memref<10x24x128xbf16, #tpu.memory_space<vmem>>, vector<8x8x128xbf16>
    %53 = vector.shape_cast %52 : vector<8x8x128xbf16> to vector<64x128xbf16>
    %c4 = arith.constant 4 : index
    %c0_57 = arith.constant 0 : index
    %c0_58 = arith.constant 0 : index
    %54 = vector.load %arg4[%c4, %c0_57, %c0_58] : memref<9x128x128xbf16, #tpu.memory_space<vmem>>, vector<1x128x128xbf16>
    %55 = vector.shape_cast %54 : vector<1x128x128xbf16> to vector<128x128xbf16>
    %cst_59 = arith.constant dense<0.000000e+00> : vector<64x128xf32>
    %56 = tpu.matmul %53, %55, %cst_59 {dimension_numbers = #tpu.dot_dimension_numbers<[1], [0], [0], [1], [0, 0, 1, 1], [], []>} : vector<64x128xbf16>, vector<128x128xbf16>, vector<64x128xf32> -> vector<64x128xf32>
    %57 = arith.addf %51, %56 : vector<64x128xf32>
    %c1_60 = arith.constant 1 : index
    %c9_61 = arith.constant 9 : index
    %c0_62 = arith.constant 0 : index
    %58 = vector.load %arg9[%c1_60, %c9_61, %c0_62] : memref<10x24x128xbf16, #tpu.memory_space<vmem>>, vector<8x8x128xbf16>
    %59 = vector.shape_cast %58 : vector<8x8x128xbf16> to vector<64x128xbf16>
    %c5 = arith.constant 5 : index
    %c0_63 = arith.constant 0 : index
    %c0_64 = arith.constant 0 : index
    %60 = vector.load %arg4[%c5, %c0_63, %c0_64] : memref<9x128x128xbf16, #tpu.memory_space<vmem>>, vector<1x128x128xbf16>
    %61 = vector.shape_cast %60 : vector<1x128x128xbf16> to vector<128x128xbf16>
    %cst_65 = arith.constant dense<0.000000e+00> : vector<64x128xf32>
    %62 = tpu.matmul %59, %61, %cst_65 {dimension_numbers = #tpu.dot_dimension_numbers<[1], [0], [0], [1], [0, 0, 1, 1], [], []>} : vector<64x128xbf16>, vector<128x128xbf16>, vector<64x128xf32> -> vector<64x128xf32>
    %63 = arith.addf %57, %62 : vector<64x128xf32>
    %c2_66 = arith.constant 2 : index
    %c7_67 = arith.constant 7 : index
    %c0_68 = arith.constant 0 : index
    %64 = vector.load %arg9[%c2_66, %c7_67, %c0_68] : memref<10x24x128xbf16, #tpu.memory_space<vmem>>, vector<8x8x128xbf16>
    %65 = vector.shape_cast %64 : vector<8x8x128xbf16> to vector<64x128xbf16>
    %c6 = arith.constant 6 : index
    %c0_69 = arith.constant 0 : index
    %c0_70 = arith.constant 0 : index
    %66 = vector.load %arg4[%c6, %c0_69, %c0_70] : memref<9x128x128xbf16, #tpu.memory_space<vmem>>, vector<1x128x128xbf16>
    %67 = vector.shape_cast %66 : vector<1x128x128xbf16> to vector<128x128xbf16>
    %cst_71 = arith.constant dense<0.000000e+00> : vector<64x128xf32>
    %68 = tpu.matmul %65, %67, %cst_71 {dimension_numbers = #tpu.dot_dimension_numbers<[1], [0], [0], [1], [0, 0, 1, 1], [], []>} : vector<64x128xbf16>, vector<128x128xbf16>, vector<64x128xf32> -> vector<64x128xf32>
    %69 = arith.addf %63, %68 : vector<64x128xf32>
    %c2_72 = arith.constant 2 : index
    %c8_73 = arith.constant 8 : index
    %c0_74 = arith.constant 0 : index
    %70 = vector.load %arg9[%c2_72, %c8_73, %c0_74] : memref<10x24x128xbf16, #tpu.memory_space<vmem>>, vector<8x8x128xbf16>
    %71 = vector.shape_cast %70 : vector<8x8x128xbf16> to vector<64x128xbf16>
    %c7_75 = arith.constant 7 : index
    %c0_76 = arith.constant 0 : index
    %c0_77 = arith.constant 0 : index
    %72 = vector.load %arg4[%c7_75, %c0_76, %c0_77] : memref<9x128x128xbf16, #tpu.memory_space<vmem>>, vector<1x128x128xbf16>
    %73 = vector.shape_cast %72 : vector<1x128x128xbf16> to vector<128x128xbf16>
    %cst_78 = arith.constant dense<0.000000e+00> : vector<64x128xf32>
    %74 = tpu.matmul %71, %73, %cst_78 {dimension_numbers = #tpu.dot_dimension_numbers<[1], [0], [0], [1], [0, 0, 1, 1], [], []>} : vector<64x128xbf16>, vector<128x128xbf16>, vector<64x128xf32> -> vector<64x128xf32>
    %75 = arith.addf %69, %74 : vector<64x128xf32>
    %c2_79 = arith.constant 2 : index
    %c9_80 = arith.constant 9 : index
    %c0_81 = arith.constant 0 : index
    %76 = vector.load %arg9[%c2_79, %c9_80, %c0_81] : memref<10x24x128xbf16, #tpu.memory_space<vmem>>, vector<8x8x128xbf16>
    %77 = vector.shape_cast %76 : vector<8x8x128xbf16> to vector<64x128xbf16>
    %c8_82 = arith.constant 8 : index
    %c0_83 = arith.constant 0 : index
    %c0_84 = arith.constant 0 : index
    %78 = vector.load %arg4[%c8_82, %c0_83, %c0_84] : memref<9x128x128xbf16, #tpu.memory_space<vmem>>, vector<1x128x128xbf16>
    %79 = vector.shape_cast %78 : vector<1x128x128xbf16> to vector<128x128xbf16>
    %cst_85 = arith.constant dense<0.000000e+00> : vector<64x128xf32>
    %80 = tpu.matmul %77, %79, %cst_85 {dimension_numbers = #tpu.dot_dimension_numbers<[1], [0], [0], [1], [0, 0, 1, 1], [], []>} : vector<64x128xbf16>, vector<128x128xbf16>, vector<64x128xf32> -> vector<64x128xf32>
    %81 = arith.addf %75, %80 : vector<64x128xf32>
    %cst_86 = arith.constant 0.000000e+00 : f32
    %82 = vector.broadcast %cst_86 : f32 to vector<64x128xf32>
    %83 = arith.maximumf %81, %82 : vector<64x128xf32>
    %84 = arith.truncf %83 : vector<64x128xf32> to vector<64x128xbf16>
    %c0_87 = arith.constant 0 : index
    %c0_88 = arith.constant 0 : index
    %c0_89 = arith.constant 0 : index
    %85 = vector.load %arg8[%c0_87, %c0_88, %c0_89] : memref<1x64x128xbf16, #tpu.memory_space<vmem>>, vector<1x64x128xbf16>
    %86 = vector.shape_cast %85 : vector<1x64x128xbf16> to vector<64x128xbf16>
    %87 = vector.shape_cast %84 : vector<64x128xbf16> to vector<1x64x128xbf16>
    tpu.vector_store %arg8[%c0_87, %c0_88, %c0_89], %87 {strides = array<i32>} : memref<1x64x128xbf16, #tpu.memory_space<vmem>>, vector<1x64x128xbf16>,
    return
  }
  func.func @transform_0(%arg0: i32) -> (i32, i32, i32) {
    %c0_i32 = arith.constant 0 : i32
    %c0_i32_0 = arith.constant 0 : i32
    %c0_i32_1 = arith.constant 0 : i32
    return %arg0, %c0_i32, %c0_i32_0 : i32, i32, i32
  }
  func.func @transform_1(%arg0: i32) -> (i32, i32) {
    %c0_i32 = arith.constant 0 : i32
    %c0_i32_0 = arith.constant 0 : i32
    %c0_i32_1 = arith.constant 0 : i32
    return %c0_i32, %c0_i32_0 : i32, i32
  }
  func.func @transform_2(%arg0: i32) -> (i32, i32) {
    %c0_i32 = arith.constant 0 : i32
    %c0_i32_0 = arith.constant 0 : i32
    %c0_i32_1 = arith.constant 0 : i32
    return %c0_i32, %c0_i32_0 : i32, i32
  }
  func.func @transform_3(%arg0: i32) -> (i32, i32, i32) {
    %c0_i32 = arith.constant 0 : i32
    %c0_i32_0 = arith.constant 0 : i32
    %c0_i32_1 = arith.constant 0 : i32
    %c0_i32_2 = arith.constant 0 : i32
    return %c0_i32, %c0_i32_0, %c0_i32_1 : i32, i32, i32
  }
  func.func @transform_4(%arg0: i32) -> (i32, i32) {
    %c0_i32 = arith.constant 0 : i32
    %c0_i32_0 = arith.constant 0 : i32
    %c0_i32_1 = arith.constant 0 : i32
    return %c0_i32, %c0_i32_0 : i32, i32
  }
  func.func @transform_5(%arg0: i32) -> (i32, i32) {
    %c0_i32 = arith.constant 0 : i32
    %c0_i32_0 = arith.constant 0 : i32
    %c0_i32_1 = arith.constant 0 : i32
    return %c0_i32, %c0_i32_0 : i32, i32
  }
  func.func @transform_6(%arg0: i32) -> (i32, i32) {
    %c0_i32 = arith.constant 0 : i32
    %c0_i32_0 = arith.constant 0 : i32
    %c0_i32_1 = arith.constant 0 : i32
    return %c0_i32, %c0_i32_0 : i32, i32
  }
  func.func @transform_7(%arg0: i32) -> (i32, i32, i32) {
    %c0_i32 = arith.constant 0 : i32
    %c0_i32_0 = arith.constant 0 : i32
    %c0_i32_1 = arith.constant 0 : i32
    return %arg0, %c0_i32, %c0_i32_0 : i32, i32, i32
  }
}

</mosaic_0001>

<bundles_post_ra>
// kernel: residual_block_forward.1
= control target key start
LH: loop header
LB: loop body
LE: loop exit
PB: predicated region body
PF: predicated region fallthrough
CT: control target
= control target key end

     0   :  { %s3906_s24 = smov 0   ;;  %s4646_s0 = inlined_call_operand.vmem [shape: bf16[2,64,128], index: 0, kind: input, shape index: {}]   ;;  %s4647_s1 = inlined_call_operand.vmem [shape: bf16[128,128], index: 1, kind: input, shape index: {}]   ;;  %s4648_s2 = inlined_call_operand.vmem [shape: f32[1,128], index: 2, kind: input, shape index: {}]   ;;  %s4649_s3 = inlined_call_operand.vmem [shape: bf16[9,128,128], index: 3, kind: input, shape index: {}]   ;;  %s4650_s4 = inlined_call_operand.vmem [shape: f32[1,128], index: 4, kind: input, shape index: {}]   ;;  %s4651_s5 = inlined_call_operand.vmem [shape: bf16[128,128], index: 5, kind: input, shape index: {}]   ;;  %s4652_s6 = inlined_call_operand.vmem [shape: f32[1,128], index: 6, kind: input, shape index: {}]   ;;  %s4653_s7 = inlined_call_operand.vmem [shape: bf16[2,64,128], index: 7, kind: output, shape index: {}]  }
   0x1 LB: > { %s2910_s25 = sadd.s32 4294967295, %s3863_s24   ;;  %p2914_p0 = scmp.ge.s32.totalorder %s3863_s24, 1  ;;  %s3863_s24 = sphi %s3906_s24, %s17_s24  }
   0x2   : > { %p237_p1 = scmp.lt.s32.totalorder %s3863_s24, 3 }
   0x4   : > { %p238_p2 = pnand %p2914_p0, %p237_p1 }
   0x5   : > { %v3754_v0 = vld [vmem:[%s4647_s1] sm:$0xff] (!%p238_p2)   ;;  %p269_p3 = scmp.lt.s32.totalorder (!%p238_p2), %s2910_s25, 1  ;;  %v3755_v1 = vld [vmem:[%s4647_s1 + $0x8] sm:$0xff] (!%p238_p2)   ;;  %v3756_v2 = vld [vmem:[%s4647_s1 + $0x10] sm:$0xff] (!%p238_p2)   ;;  %v3865_v29 = vmov (!%p238_p2), 0  }
   0x6   : > { %241 = sbr.rel (%p238_p2) target bundleno = 662 (0x296), region = 48  ;;  %3377 = vmatprep.subr.bf16.mxu0 (!%p238_p2), %v3754_v0  ;;  %v3757_v3 = vld [vmem:[%s4647_s1 + $0x18] sm:$0xff] (!%p238_p2)   ;;  %v3758_v5 = vld [vmem:[%s4647_s1 + $0x20] sm:$0xff] (!%p238_p2)   ;;  %v3759_v6 = vld [vmem:[%s4647_s1 + $0x28] sm:$0xff] (!%p238_p2)   ;;  %280 = vst [vmem:[#allocation2] sm:$0xf] (!%p238_p2), %v3865_v29 }
   0x7   : > { %3378 = vmatpush3.bf16.msra.mxu0 (!%p238_p2), %v3754_v0  ;;  %v3760_v7 = vld [vmem:[%s4647_s1 + $0x30] sm:$0xff] (!%p238_p2)   ;;  %v3775_v8 = vld [vmem:[%s4649_s3 + $0xc0] sm:$0xff] (!%p238_p2)   ;;  %v3761_v9 = vld [vmem:[%s4647_s1 + $0x38] sm:$0xff] (!%p238_p2)   ;;  %281 = vst [vmem:[#allocation2 + $0x4] sm:$0xf] (!%p238_p2), %v3865_v29 }
   0x8   : > { %3379 = vmatprep.subr.bf16.mxu0 (!%p238_p2), %v3755_v1  ;;  %3497 = vmatprep.subr.bf16.mxu1 (!%p238_p2), %v3775_v8  ;;  %v3777_v10 = vld [vmem:[%s4649_s3 + $0xc8] sm:$0xff] (!%p238_p2)   ;;  %v3766_v11 = vld [vmem:[%s4651_s5] sm:$0xff] (!%p238_p2)   ;;  %v3768_v15 = vld [vmem:[%s4651_s5 + $0x10] sm:$0xff] (!%p238_p2)   ;;  %288 = vst [vmem:[#allocation2 + $0xc] sm:$0xf] (!%p238_p2), %v3865_v29 }
   0x9   : > { %3498 = vmatpush3.bf16.msra.mxu1 (!%p238_p2), %v3775_v8  ;;  %v3767_v14 = vld [vmem:[%s4651_s5 + $0x8] sm:$0xff] (!%p238_p2)   ;;  %v3769_v17 = vld [vmem:[%s4651_s5 + $0x18] sm:$0xff] (!%p238_p2)   ;;  %v3770_v18 = vld [vmem:[%s4651_s5 + $0x20] sm:$0xff] (!%p238_p2)   ;;  %282 = vst [vmem:[#allocation2 + $0x8] sm:$0xf] (!%p238_p2), %v3865_v29 }
   0xa   : > { %3499 = vmatprep.subr.bf16.mxu1 (!%p238_p2), %v3777_v10  ;;  %v3771_v19 = vld [vmem:[%s4651_s5 + $0x28] sm:$0xff] (!%p238_p2)   ;;  %v3772_v20 = vld [vmem:[%s4651_s5 + $0x30] sm:$0xff] (!%p238_p2)   ;;  %v3773_v21 = vld [vmem:[%s4651_s5 + $0x38] sm:$0xff] (!%p238_p2)   ;;  %284 = vst [vmem:[#allocation2 + $0x6c] sm:$0xf] (!%p238_p2), %v3865_v29 }
   0xb   : > { %3380 = vmatpush3.bf16.msra.mxu0 (!%p238_p2), %v3755_v1  ;;  %v3774_v22 = vld [vmem:[%s4649_s3] sm:$0xff] (!%p238_p2)   ;;  %v3776_v23 = vld [vmem:[%s4649_s3 + $0x8] sm:$0xff] (!%p238_p2)   ;;  %v3778_v24 = vld [vmem:[%s4649_s3 + $0x10] sm:$0xff] (!%p238_p2)   ;;  %285 = vst [vmem:[#allocation2 + $0x70] sm:$0xf] (!%p238_p2), %v3865_v29 }
   0xc   : > { %3381 = vmatprep.subr.bf16.mxu0 (!%p238_p2), %v3756_v2  ;;  %v3779_v25 = vld [vmem:[%s4649_s3 + $0xd0] sm:$0xff] (!%p238_p2)   ;;  %v3780_v26 = vld [vmem:[%s4649_s3 + $0x18] sm:$0xff] (!%p238_p2)   ;;  %v3782_v28 = vld [vmem:[%s4649_s3 + $0x20] sm:$0xff] (!%p238_p2)   ;;  %286 = vst [vmem:[#allocation2 + $0x74] sm:$0xf] (!%p238_p2), %v3865_v29 }
   0xd   : > { %s4659_s25 = smov (!%p269_p3, %s2910_s25), 1  ;;  %3500 = vmatpush3.bf16.msra.mxu1 %v3777_v10  ;;  %v3781_v27 = vld [vmem:[%s4649_s3 + $0xd8] sm:$0xff]   ;;  %289 = vst [vmem:[#allocation2 + $0x18] sm:$0xf] %v3865_v29  ;;  %290 = vst [vmem:[#allocation2 + $0x24] sm:$0xf] %v3865_v29 }
   0xe   : > { %s3212_s9 = sshll.u32 %s4659_s25, 5  ;;  %3501 = vmatprep.subr.bf16.mxu1 %v3779_v25  ;;  %291 = vst [vmem:[#allocation2 + $0x30] sm:$0xf] %v3865_v29  ;;  %292 = vst [vmem:[#allocation2 + $0x3c] sm:$0xf] %v3865_v29  ;;  %v3783_v30 = vld [vmem:[%s4649_s3 + $0xe0] sm:$0xff]  }
   0xf   : > { %s3931_s12 = scalar_lea.vmem %s4646_s0, %s3212_s9  ;;  %3382 = vmatpush3.bf16.msra.mxu0 %v3756_v2  ;;  %293 = vst [vmem:[#allocation2 + $0x48] sm:$0xf] %v3865_v29  ;;  %294 = vst [vmem:[#allocation2 + $0x54] sm:$0xf] %v3865_v29  ;;  %v3784_v31 = vld [vmem:[%s4649_s3 + $0x28] sm:$0xff]   ;;  %v3786_v33 = vld [vmem:[%s4649_s3 + $0x30] sm:$0xff]   ;;  %s278_s11 = scalar_lea.vmem %s4653_s7, %s3212_s9 }
  0x10   : > { %v3762_v4 = vld [vmem:[%s3931_s12] sm:$0xff]   ;;  %3383 = vmatprep.subr.bf16.mxu0 %v3757_v3  ;;  %v3763_v12 = vld [vmem:[%s3931_s12 + $0x8] sm:$0xff]   ;;  %v3764_v13 = vld [vmem:[%s3931_s12 + $0x10] sm:$0xff]   ;;  %295 = vst [vmem:[#allocation2 + $0x60] sm:$0xf] %v3865_v29 }
  0x11   : > { %3393 = vmatprep.mubr.bf16.mxu0 %v3762_v4  ;;  %v3765_v16 = vld [vmem:[%s3931_s12 + $0x18] sm:$0xff]   ;;  %3502 = vmatpush3.bf16.msra.mxu1 %v3779_v25  ;;  %296 = vst [vmem:[#allocation2 + $0x14] sm:$0xf] %v3865_v29  ;;  %297 = vst [vmem:[#allocation2 + $0x20] sm:$0xf] %v3865_v29  ;;  %v3785_v32 = vld [vmem:[%s4649_s3 + $0xe8] sm:$0xff]  }
  0x12   : > { %3503 = vmatprep.subr.bf16.mxu1 %v3781_v27  ;;  %298 = vst [vmem:[#allocation2 + $0x2c] sm:$0xf] %v3865_v29  ;;  %299 = vst [vmem:[#allocation2 + $0x38] sm:$0xf] %v3865_v29  ;;  %v3787_v34 = vld [vmem:[%s4649_s3 + $0xf0] sm:$0xff]   ;;  %v3788_v35 = vld [vmem:[%s4649_s3 + $0x38] sm:$0xff]  }
  0x13   : > { %3384 = vmatpush3.bf16.msra.mxu0 %v3757_v3  ;;  %300 = vst [vmem:[#allocation2 + $0x44] sm:$0xf] %v3865_v29  ;;  %301 = vst [vmem:[#allocation2 + $0x50] sm:$0xf] %v3865_v29  ;;  %v3789_v36 = vld [vmem:[%s4649_s3 + $0xf8] sm:$0xff]   ;;  %v4027_v37 = vld [vmem:[%s4649_s3 + $0x40] sm:$0xff]  }
  0x14   : > { %3385 = vmatprep.subr.bf16.mxu0 %v3758_v5  ;;  %302 = vst [vmem:[#allocation2 + $0x5c] sm:$0xf] %v3865_v29  ;;  %303 = vst [vmem:[#allocation2 + $0x68] sm:$0xf] %v3865_v29  ;;  %v4033_v38 = vld [vmem:[%s4649_s3 + $0x100] sm:$0xff]  }
  0x15   : > { %3504 = vmatpush3.bf16.msra.mxu1 %v3781_v27  ;;  %v4036_v39 = vld [vmem:[#allocation2 + $0x4] sm:$0xf]  ;;  %v647_v40 = vld [vmem:[#allocation2] sm:$0x8]  ;;  %v649_v41 = vld [vmem:[#allocation2 + $0xc] sm:$0x8] }
  0x16   : > { %3505 = vmatprep.subr.bf16.mxu1 %v3783_v30  ;;  %v653_v42 = vld [vmem:[#allocation2 + $0x24] sm:$0x8]  ;;  %v651_v43 = vld [vmem:[#allocation2 + $0x18] sm:$0x8]  ;;  %v4041_v44 = vld [vmem:[%s4648_s2] ss:$0 sm:$0xff] }
  0x17   : > { %3386 = vmatpush3.bf16.msra.mxu0 %v3758_v5  ;;  %v672_v45 = vshrl.u32 %v4036_v39, 16  ;;  %v667_v46 = vshrl.u32 %v647_v40, 16  ;;  %v680_v47 = vshrl.u32 %v649_v41, 16  ;;  %v706_v48 = vshrl.u32 %v653_v42, 16  ;;  %v1370_v49 = vld [vmem:[#allocation2 + $0xc] sm:$0x8] }
  0x18   : > { %3387 = vmatprep.subr.bf16.mxu0 %v3759_v6  ;;  %v693_v50 = vshrl.u32 %v651_v43, 16  ;;  %v1372_v52 = vld [vmem:[#allocation2 + $0x18] sm:$0x8]  ;;  %v675_v56 = vshll.u32 %v4036_v39, 16  ;;  %v1387_v57 = vshrl.u32 %v1370_v49, 16 }
  0x19   : > { %3506 = vmatpush3.bf16.msra.mxu1 %v3783_v30  ;;  %v674_v55 = vrot.slane %v672_v45, 7  ;;  %v1374_v58 = vld [vmem:[#allocation2 + $0x24] sm:$0x8]  ;;  %v4047_v61 = vrot.slane %v667_v46, 11  ;;  %v4049_v62 = vrot.slane %v680_v47, 11  ;;  %v4051_v63 = vrot.slane %v706_v48, 11 }
  0x1a   : > { %3507 = vmatprep.subr.bf16.mxu1 %v3785_v32  ;;  %vm663_vm0 = vsmask.f32 256  ;;  %vm664_vm1 = vsmask.f32 4368  ;;  %v4054_v3 = vrot.slane %v693_v50, 11  ;;  %v1413_v8 = vshrl.u32 %v1374_v58, 16 }
  0x1b   : > { %3388 = vmatpush3.bf16.msra.mxu0 %v3759_v6  ;;  %v1376_v5 = vld [vmem:[#allocation2 + $0x30] sm:$0x8]  ;;  %v657_v10 = vld [vmem:[#allocation2 + $0x3c] sm:$0x8]  ;;  %v1382_v25 = vld [vmem:[#allocation2 + $0x54] sm:$0x8] }
  0x1c   : > { %3389 = vmatprep.subr.bf16.mxu0 %v3760_v7  ;;  %v1465_v43 = vshrl.u32 %v1382_v25, 16  ;;  %vm4085_vm2 = vmor %vm663_vm0, %vm664_vm1  ;;  %vm1101_vm3 = vsmask.f32 3328  ;;  %vm1102_vm4 = vsmask.f32 7440 }
  0x1d   : > { %3508 = vmatpush3.bf16.msra.mxu1 %v3785_v32  ;;  %vm4290_vm5 = vmor %vm1101_vm3, %vm1102_vm4 }
  0x1e   : > { %3509 = vmatprep.subr.bf16.mxu1 %v3787_v34 }
  0x1f   : > { %3390 = vmatpush3.bf16.msra.mxu0 %v3760_v7 }
  0x20   : > { %3391 = vmatprep.subr.bf16.mxu0 %v3761_v9 }
  0x21   : > { %3510 = vmatpush3.bf16.msra.mxu1 %v3787_v34  ;;  %v4064_v34 = vrot.slane %v1413_v8, 11 }
  0x22   : > { %3511 = vmatprep.subr.bf16.mxu1 %v3789_v36 }
  0x23   : > { %3392 = vmatpush3.bf16.msra.mxu0 %v3761_v9  ;;  %v655_v9 = vld [vmem:[#allocation2 + $0x30] sm:$0x8] }
  0x24   : > { %3401 = vmatprep.subr.bf16.mxu0 %v3766_v11 }
  0x25   : > { %3512 = vmatpush3.bf16.msra.mxu1 %v3789_v36 }
  0x26   : > { %3394 = vmatmul.mubr.bf16.vlgmr.msra.gmra.mrb[0].mxu0 %v3763_v12  ;;  %3521 = vmatprep.subr.bf16.mxu1 %v4033_v38 }
  0x27   : > { %3397 = vmatprep.mubr.bf16.mxu0 %v3764_v13  ;;  %3402 = vmatpush3.bf16.msra.mxu0 %v3766_v11 }
  0x28   : > { %3403 = vmatprep.subr.bf16.mxu0 %v3767_v14 }
  0x2b   : > { %3404 = vmatpush3.bf16.msra.mxu0 %v3767_v14  ;;  %v659_v14 = vld [vmem:[#allocation2 + $0x48] sm:$0x8] }
  0x2c   : > { %3405 = vmatprep.subr.bf16.mxu0 %v3768_v15  ;;  %v745_v30 = vshrl.u32 %v659_v14, 16 }
  0x2e   : > { %3398 = vmatmul.mubr.bf16.gmra.mrb[4].mxu0 %v3765_v16 }
  0x2f   : > { %3406 = vmatpush3.bf16.msra.mxu0 %v3768_v15  ;;  %3417 = vmatprep.mubr.bf16.mxu0 %v3762_v4  ;;  %v1400_v4 = vshrl.u32 %v1372_v52, 16  ;;  %v661_v15 = vld [vmem:[#allocation2 + $0x54] sm:$0x8] }
  0x30   : > { %3407 = vmatprep.subr.bf16.mxu0 %v3769_v17 }
  0x31   : > { %v4061_v29 = vrot.slane %v1400_v4, 11 }
  0x33   : > { %3408 = vmatpush3.bf16.msra.mxu0 %v3769_v17 }
  0x34   : > { %3409 = vmatprep.subr.bf16.mxu0 %v3770_v18 }
  0x37   : > { %3410 = vmatpush3.bf16.msra.mxu0 %v3770_v18  ;;  %v1426_v18 = vshrl.u32 %v1376_v5, 16 }
  0x38   : > { %3411 = vmatprep.subr.bf16.mxu0 %v3771_v19 }
  0x39   : > { %v4067_v42 = vrot.slane %v1426_v18, 11 }
  0x3b   : > { %3412 = vmatpush3.bf16.msra.mxu0 %v3771_v19  ;;  %v1378_v19 = vld [vmem:[#allocation2 + $0x3c] sm:$0x8] }
  0x3c   : > { %3413 = vmatprep.subr.bf16.mxu0 %v3772_v20 }
  0x3f   : > { %3414 = vmatpush3.bf16.msra.mxu0 %v3772_v20  ;;  %v1380_v20 = vld [vmem:[#allocation2 + $0x48] sm:$0x8] }
  0x40   : > { %3415 = vmatprep.subr.bf16.mxu0 %v3773_v21  ;;  %v1452_v36 = vshrl.u32 %v1380_v20, 16 }
  0x42   : > { %v4081_v58 = vrot.slane %v1452_v36, 11 }
  0x43   : > { %3416 = vmatpush3.bf16.msra.mxu0 %v3773_v21 }
  0x44   : > { %3425 = vmatprep.subr.bf16.mxu0 %v3774_v22 }
  0x46   : > { %3418 = vmatmul.mubr.bf16.vlgmr.msra.gmra.mrb[8].mxu0 %v3763_v12 }
  0x47   : > { %3426 = vmatpush3.bf16.msra.mxu0 %v3774_v22  ;;  %3421 = vmatprep.mubr.bf16.mxu0 %v3764_v13  ;;  %v4057_v13 = vrot.slane %v1387_v57, 11  ;;  %v4059_v22 = vor.u32 %v675_v56, %v674_v55 }
  0x48   : > { %3427 = vmatprep.subr.bf16.mxu0 %v3776_v23 }
  0x4b   : > { %3428 = vmatpush3.bf16.msra.mxu0 %v3776_v23  ;;  %v719_v23 = vshrl.u32 %v655_v9, 16 }
  0x4c   : > { %3429 = vmatprep.subr.bf16.mxu0 %v3778_v24 }
  0x4d   : > { %v4070_v49 = vrot.slane %v719_v23, 11 }
  0x4e   : > { %3422 = vmatmul.mubr.bf16.gmra.mrb[12].mxu0 %v3765_v16 }
  0x4f   : > { %3430 = vmatpush3.bf16.msra.mxu0 %v3778_v24  ;;  %v732_v24 = vshrl.u32 %v657_v10, 16 }
  0x50   : > { %3431 = vmatprep.subr.bf16.mxu0 %v3780_v26 }
  0x51   : > { %v4072_v50 = vrot.slane %v732_v24, 11 }
  0x53   : > { %3432 = vmatpush3.bf16.msra.mxu0 %v3780_v26  ;;  %v1384_v26 = vld [vmem:[#allocation2 + $0x60] sm:$0x8] }
  0x54   : > { %3433 = vmatprep.subr.bf16.mxu0 %v3782_v28  ;;  %v1478_v45 = vshrl.u32 %v1384_v26, 16 }
  0x57   : > { %3434 = vmatpush3.bf16.msra.mxu0 %v3782_v28 }
  0x58   : > { %3435 = vmatprep.subr.bf16.mxu0 %v3784_v31 }
  0x5b   : > { %3436 = vmatpush3.bf16.msra.mxu0 %v3784_v31  ;;  %v758_v31 = vshrl.u32 %v661_v15, 16  ;;  %v678_v15 = vsel %vm4085_vm2, %v4047_v61, %v4059_v22 }
  0x5c   : > { %3437 = vmatprep.subr.bf16.mxu0 %v3786_v33 }
  0x5f   : > { %3438 = vmatpush3.bf16.msra.mxu0 %v3786_v33 }
  0x60   : > { %3439 = vmatprep.subr.bf16.mxu0 %v3788_v35 }
  0x63   : > { %3440 = vmatpush3.bf16.msra.mxu0 %v3788_v35  ;;  %v1439_v35 = vshrl.u32 %v1378_v19, 16 }
  0x64   : > { %3449 = vmatprep.subr.bf16.mxu0 %v4027_v37 }
  0x65   : > { %v4079_v57 = vrot.slane %v1439_v35, 11 }
  0xf9   : > { %v3395_v51 = vpop.f32.mrb[0].mxu0 }
  0xfa   : > { %v450_v53 = vadd.f32 %v3395_v51, %v4041_v44  ;;  %v441_v54 = vpop.f32.mrb[1].mxu0 }
  0xfb   : > { %v442_v59 = vadd.f32 %v4041_v44, %v441_v54  ;;  %v3396_v60 = vpop.f32.mrb[2].mxu0  ;;  %v4077_v54 = vrot.slane %v758_v31, 11 }
  0xfc   : > { %v474_v0 = vmax.f32 %v450_v53, 0.0  ;;  %v453_v1 = vadd.f32 %v3396_v60, %v4041_v44  ;;  %v444_v2 = vpop.f32.mrb[3].mxu0  ;;  %v4075_v53 = vrot.slane %v745_v30, 11 }
  0xfd   : > { %v472_v6 = vmax.f32 %v442_v59, 0.0  ;;  %v445_v7 = vadd.f32 %v4041_v44, %v444_v2  ;;  %v4093_v2 = vrot.slane %v1478_v45, 11 }
  0xfe   : > { %v482_v11 = vpack.c.bf16 %v474_v0, %v474_v0  ;;  %v475_v12 = vmax.f32 %v453_v1, 0.0  ;;  %v3851_v0 = vld [vmem:[%s4649_s3 + $0x1e8] sm:$0xff]  }
  0xff   : > { %v480_v16 = vpack.c.bf16 %v472_v6, %v472_v6  ;;  %v473_v17 = vmax.f32 %v445_v7, 0.0 }
 0x100   : > { %490 = vst [vmem:[#allocation2 + $0x28] sm:$0xf] %v482_v11  ;;  %v483_v21 = vpack.c.bf16 %v475_v12, %v475_v12 }
 0x101   : > { %488 = vst [vmem:[#allocation2 + $0x10] sm:$0xf] %v480_v16  ;;  %v481_v27 = vpack.c.bf16 %v473_v17, %v473_v17  ;;  %v3399_v28 = vpop.f32.mrb[4].mxu0 }
 0x102   : > { %491 = vst [vmem:[#allocation2 + $0x34] sm:$0xf] %v483_v21  ;;  %v466_v32 = vadd.f32 %v3399_v28, %v4041_v44  ;;  %v457_v33 = vpop.f32.mrb[5].mxu0 }
 0x103   : > { %489 = vst [vmem:[#allocation2 + $0x1c] sm:$0xf] %v481_v27  ;;  %v458_v40 = vadd.f32 %v4041_v44, %v457_v33  ;;  %v3400_v41 = vpop.f32.mrb[6].mxu0 }
 0x104   : > { %v478_v46 = vmax.f32 %v466_v32, 0.0  ;;  %v469_v47 = vadd.f32 %v3400_v41, %v4041_v44  ;;  %v460_v48 = vpop.f32.mrb[7].mxu0 }
 0x105   : > { %v476_v51 = vmax.f32 %v458_v40, 0.0  ;;  %v461_v52 = vadd.f32 %v4041_v44, %v460_v48  ;;  %v4091_v44 = vrot.slane %v1465_v43, 11 }
 0x106   : > { %v486_v55 = vpack.c.bf16 %v478_v46, %v478_v46  ;;  %v479_v56 = vmax.f32 %v469_v47, 0.0 }
 0x107   : > { %v484_v59 = vpack.c.bf16 %v476_v51, %v476_v51  ;;  %v477_v60 = vmax.f32 %v461_v52, 0.0  ;;  %v4089_v1 = vld [vmem:[#allocation2 + $0x28] sm:$0xf] }
 0x108   : > { %494 = vst [vmem:[#allocation2 + $0x58] sm:$0xf] %v486_v55  ;;  %v487_v4 = vpack.c.bf16 %v479_v56, %v479_v56  ;;  %v4095_v5 = vld [vmem:[#allocation2 + $0x10] sm:$0xf]  ;;  %v711_v6 = vshrl.u32 %v4089_v1, 16  ;;  %v714_v7 = vshll.u32 %v4089_v1, 16 }
 0x109   : > { %v4099_v8 = vld [vmem:[#allocation2 + $0x10] sm:$0xf]  ;;  %492 = vst [vmem:[#allocation2 + $0x40] sm:$0xf] %v484_v59  ;;  %v485_v9 = vpack.c.bf16 %v477_v60, %v477_v60  ;;  %v685_v10 = vshrl.u32 %v4095_v5, 16  ;;  %v688_v11 = vshll.u32 %v4095_v5, 16 }
 0x10a   : > { %v1392_v12 = vshrl.u32 %v4099_v8, 16  ;;  %v4104_v14 = vld [vmem:[#allocation2 + $0x28] sm:$0xf]  ;;  %495 = vst [vmem:[#allocation2 + $0x64] sm:$0xf] %v487_v4  ;;  %v713_v17 = vrot.slane %v711_v6, 7 }
 0x10b   : > { %v4110_v16 = vld [vmem:[#allocation2 + $0x1c] sm:$0xf]  ;;  %v1395_v19 = vshll.u32 %v4099_v8, 16  ;;  %493 = vst [vmem:[#allocation2 + $0x4c] sm:$0xf] %v485_v9  ;;  %v687_v20 = vrot.slane %v685_v10, 7 }
 0x10c   : > { %v4112_v18 = vld [vmem:[#allocation2 + $0x1c] sm:$0xf]  ;;  %v698_v21 = vshrl.u32 %v4110_v16, 16  ;;  %v701_v23 = vshll.u32 %v4110_v16, 16  ;;  %v1394_v24 = vrot.slane %v1392_v12, 7  ;;  %v716_v26 = vor.u32 %v714_v7, %v713_v17 }
 0x10d   : > { %v4117_v25 = vld [vmem:[#allocation2 + $0x34] sm:$0xf]  ;;  %v1405_v27 = vshrl.u32 %v4112_v18, 16  ;;  %v1408_v61 = vshll.u32 %v4112_v18, 16  ;;  %v1418_v22 = vshrl.u32 %v4104_v14, 16  ;;  %v690_v28 = vor.u32 %v688_v11, %v687_v20 }
 0x10e   : > { %v700_v30 = vrot.slane %v698_v21, 7  ;;  %v1397_v31 = vor.u32 %v1395_v19, %v1394_v24  ;;  %v1421_v32 = vshll.u32 %v4104_v14, 16  ;;  %v717_v33 = vsel %vm4085_vm2, %v4051_v63, %v716_v26  ;;  %v4127_v41 = vld [vmem:[#allocation2 + $0x34] sm:$0xf]  ;;  %v3793_v26 = vld [vmem:[%s4649_s3 + $0x108] sm:$0xff]  }
 0x10f   : > { %v1407_v35 = vrot.slane %v1405_v27, 7  ;;  %v1420_v36 = vrot.slane %v1418_v22, 7  ;;  %v1431_v40 = vshrl.u32 %v4117_v25, 16  ;;  %v691_v43 = vsel %vm4085_vm2, %v4049_v62, %v690_v28  ;;  %v4144_v4 = vld [vmem:[#allocation2 + $0x58] sm:$0xf] }
 0x110   : > { %v703_v45 = vor.u32 %v701_v23, %v700_v30  ;;  %v1398_v46 = vsel %vm4085_vm2, %v4057_v13, %v1397_v31  ;;  %v1434_v47 = vshll.u32 %v4117_v25, 16  ;;  %v2950_v48 = vcombine.low %v678_v15, %v691_v43  ;;  %v4136_v55 = vld [vmem:[#allocation2 + $0x40] sm:$0xf]  ;;  %v4176_v28 = vld [vmem:[#allocation2 + $0x58] sm:$0xf] }
 0x111   : > { %v1410_v51 = vor.u32 %v1408_v61, %v1407_v35  ;;  %v1423_v63 = vor.u32 %v1421_v32, %v1420_v36  ;;  %v1433_v52 = vrot.slane %v1431_v40, 7  ;;  %v724_v59 = vshrl.u32 %v4127_v41, 16  ;;  %v4158_v19 = vld [vmem:[#allocation2 + $0x40] sm:$0xf] }
 0x112   : > { %v704_v56 = vsel %vm4085_vm2, %v4054_v3, %v703_v45  ;;  %v727_v62 = vshll.u32 %v4127_v41, 16  ;;  %v737_v60 = vshrl.u32 %v4136_v55, 16  ;;  %3441 = vmatprep.mubr.bf16.mxu0 %v2950_v48  ;;  %v3792_v3 = vld [vmem:[%s4649_s3 + $0x48] sm:$0xff]   ;;  %v740_v17 = vshll.u32 %v4136_v55, 16 }
 0x113   : > { %v2951_v13 = vcombine.low %v704_v56, %v717_v33  ;;  %v1411_v6 = vsel %vm4085_vm2, %v4061_v29, %v1410_v51  ;;  %v1424_v7 = vsel %vm4085_vm2, %v4064_v34, %v1423_v63  ;;  %v1436_v9 = vor.u32 %v1434_v47, %v1433_v52  ;;  %v4155_v10 = vld [vmem:[#allocation2 + $0x4c] sm:$0xf]  ;;  %v4180_v33 = vld [vmem:[#allocation2 + $0x64] sm:$0xf] }
 0x114   : > { %v3042_v11 = vcombine.low %v1398_v46, %v1411_v6  ;;  %v726_v12 = vrot.slane %v724_v59, 7  ;;  %v739_v15 = vrot.slane %v737_v60, 7  ;;  %v750_v34 = vshrl.u32 %v4155_v10, 16  ;;  %v4166_v23 = vld [vmem:[#allocation2 + $0x4c] sm:$0xf] }
 0x115   : > { %3442 = vmatmul.mubr.bf16.vlgmr.msra.gmra.mrb[8].mxu0 %v2951_v13  ;;  %v1437_v29 = vsel %vm4085_vm2, %v4067_v42, %v1436_v9  ;;  %v753_v20 = vshll.u32 %v4155_v10, 16  ;;  %v763_v21 = vshrl.u32 %v4144_v4, 16  ;;  %v3794_v42 = vld [vmem:[%s4649_s3 + $0x50] sm:$0xff]   ;;  %v766_v22 = vshll.u32 %v4144_v4, 16  ;;  %v3797_v9 = vld [vmem:[%s4649_s3 + $0x58] sm:$0xff]  }
 0x116   : > { %3450 = vmatpush3.bf16.msra.mxu0 %v4027_v37  ;;  %3513 = vmatprep.mubr.bf16.mxu1 %v3042_v11  ;;  %v3043_v24 = vcombine.low %v1424_v7, %v1437_v29  ;;  %v729_v27 = vor.u32 %v727_v62, %v726_v12  ;;  %v742_v61 = vor.u32 %v740_v17, %v739_v15  ;;  %v752_v30 = vrot.slane %v750_v34, 7  ;;  %v3798_v15 = vld [vmem:[%s4649_s3 + $0x118] sm:$0xff]   ;;  %v1085_v34 = vld [vmem:[#allocation2 + $0x4] sm:$0xf] }
 0x117   : > { %3451 = vmatprep.subr.bf16.mxu0 %v3792_v3  ;;  %v765_v31 = vrot.slane %v763_v21, 7  ;;  %v1444_v37 = vshrl.u32 %v4158_v19, 16  ;;  %v1447_v32 = vshll.u32 %v4158_v19, 16  ;;  %v1457_v40 = vshrl.u32 %v4166_v23, 16 }
 0x118   : > { %3514 = vmatmul.mubr.bf16.vlgmr.msra.gmra.mrb[0].mxu1 %v3043_v24  ;;  %v730_v35 = vsel %vm4085_vm2, %v4070_v49, %v729_v27  ;;  %v743_v36 = vsel %vm4085_vm2, %v4072_v50, %v742_v61  ;;  %v1460_v43 = vshll.u32 %v4166_v23, 16  ;;  %v755_v46 = vor.u32 %v753_v20, %v752_v30  ;;  %v3795_v49 = vld [vmem:[%s4649_s3 + $0x110] sm:$0xff]   ;;  %v1808_v30 = vld [vmem:[#allocation2 + $0x1c] sm:$0xf] }
 0x119   : > { %3522 = vmatpush3.bf16.msra.mxu1 %v4033_v38  ;;  %v2952_v45 = vcombine.low %v730_v35, %v743_v36  ;;  %v768_v47 = vor.u32 %v766_v22, %v765_v31  ;;  %v1446_v48 = vrot.slane %v1444_v37, 7  ;;  %v1459_v51 = vrot.slane %v1457_v40, 7  ;;  %v1087_v24 = vld [vmem:[#allocation2 + $0x10] sm:$0xf]  ;;  %v1088_v27 = vld [vmem:[#allocation2 + $0x14] sm:$0x1] }
 0x11a   : > { %3452 = vmatpush3.bf16.msra.mxu0 %v3792_v3  ;;  %3523 = vmatprep.subr.bf16.mxu1 %v3793_v26  ;;  %v1470_v63 = vshrl.u32 %v4176_v28, 16  ;;  %v1473_v50 = vshll.u32 %v4176_v28, 16  ;;  %v1483_v52 = vshrl.u32 %v4180_v33, 16  ;;  %v756_v38 = vsel %vm4085_vm2, %v4075_v53, %v755_v46  ;;  %v1807_v22 = vld [vmem:[#allocation2 + $0x14] sm:$0x1]  ;;  %v3805_v46 = vld [vmem:[%s4649_s3 + $0x78] sm:$0xff]  }
 0x11b   : > { %3445 = vmatprep.mubr.bf16.mxu0 %v2952_v45  ;;  %3453 = vmatprep.subr.bf16.mxu0 %v3794_v42  ;;  %v769_v56 = vsel %vm4085_vm2, %v4077_v54, %v768_v47  ;;  %v1449_v59 = vor.u32 %v1447_v32, %v1446_v48  ;;  %v1486_v62 = vshll.u32 %v4180_v33, 16  ;;  %v1462_v13 = vor.u32 %v1460_v43, %v1459_v51  ;;  %v3804_v31 = vld [vmem:[%s4649_s3 + $0x130] sm:$0xff]   ;;  %v1809_v36 = vld [vmem:[#allocation2 + $0x20] sm:$0x1]  ;;  %v1092_v45 = vld [vmem:[#allocation2 + $0x2c] sm:$0x1] }
 0x11c   : > { %v2953_v60 = vcombine.low %v756_v38, %v769_v56  ;;  %v1472_v6 = vrot.slane %v1470_v63, 7  ;;  %v1485_v7 = vrot.slane %v1483_v52, 7  ;;  %v2978_v3 = vcombine.low %v4036_v39, %v4095_v5  ;;  %v1806_v40 = vld [vmem:[#allocation2 + $0x10] sm:$0xf]  ;;  %v1090_v43 = vld [vmem:[#allocation2 + $0x20] sm:$0x1] }
 0x11d   : > { %3524 = vmatpush3.bf16.msra.mxu1 %v3793_v26  ;;  %v1450_v53 = vsel %vm4085_vm2, %v4079_v57, %v1449_v59  ;;  %v1463_v54 = vsel %vm4085_vm2, %v4081_v58, %v1462_v13  ;;  %v3799_v58 = vld [vmem:[%s4649_s3 + $0x60] sm:$0xff]   ;;  %v3070_v29 = vcombine.low %v4099_v8, %v4112_v18  ;;  %v1105_v20 = vshrl.u32 %v1085_v34, 16  ;;  %v3802_v8 = vld [vmem:[%s4649_s3 + $0x128] sm:$0xff]   ;;  %v3803_v26 = vld [vmem:[%s4649_s3 + $0x70] sm:$0xff]  }
 0x11e   : > { %3446 = vmatmul.mubr.bf16.gmra.mrb[12].mxu0 %v2953_v60  ;;  %3525 = vmatprep.subr.bf16.mxu1 %v3795_v49  ;;  %v1475_v11 = vor.u32 %v1473_v50, %v1472_v6  ;;  %v1488_v12 = vor.u32 %v1486_v62, %v1485_v7  ;;  %v3044_v17 = vcombine.low %v1450_v53, %v1463_v54  ;;  %v1108_v21 = vshll.u32 %v1085_v34, 16  ;;  %v1086_v18 = vld [vmem:[#allocation2 + $0x8] sm:$0x1]  ;;  %v1811_v38 = vld [vmem:[#allocation2 + $0x2c] sm:$0x1]  ;;  %v3806_v56 = vld [vmem:[%s4649_s3 + $0x138] sm:$0xff]  }
 0x11f   : > { %3454 = vmatpush3.bf16.msra.mxu0 %v3794_v42  ;;  %3465 = vmatprep.mubr.bf16.mxu0 %v2978_v3  ;;  %v1107_v61 = vrot.slane %v1105_v20, 4  ;;  %v1114_v37 = vshll.u32 %v1086_v18, 16  ;;  %v1119_v32 = vshrl.u32 %v1087_v24, 16  ;;  %v1122_v35 = vshll.u32 %v1087_v24, 16  ;;  %v1813_v3 = vld [vmem:[#allocation2 + $0x38] sm:$0x1] }
 0x120   : > { %v1476_v57 = vsel %vm4085_vm2, %v4091_v44, %v1475_v11  ;;  %v1489_v39 = vsel %vm4085_vm2, %v4093_v2, %v1488_v12  ;;  %3455 = vmatprep.subr.bf16.mxu0 %v3797_v9  ;;  %3517 = vmatprep.mubr.bf16.mxu1 %v3044_v17  ;;  %v3800_v44 = vld [vmem:[%s4649_s3 + $0x120] sm:$0xff]   ;;  %v3801_v2 = vld [vmem:[%s4649_s3 + $0x68] sm:$0xff]   ;;  %v1110_v42 = vrot.slane %v1108_v21, 5  ;;  %v1128_v47 = vshll.u32 %v1088_v27, 16  ;;  %v1089_v21 = vld [vmem:[#allocation2 + $0x1c] sm:$0xf] }
 0x121   : > { %v3045_v5 = vcombine.low %v1476_v57, %v1489_v39  ;;  %3526 = vmatpush3.bf16.msra.mxu1 %v3795_v49  ;;  %v1837_v48 = vshrl.u32 %v1808_v30, 16  ;;  %v1840_v51 = vshll.u32 %v1808_v30, 16  ;;  %v1094_v49 = vld [vmem:[#allocation2 + $0x38] sm:$0x1]  ;;  %v1832_v50 = vshll.u32 %v1807_v22, 16  ;;  %v3808_v54 = vld [vmem:[%s4649_s3 + $0x80] sm:$0xff]  }
 0x122   : > { %3527 = vmatprep.subr.bf16.mxu1 %v3798_v15  ;;  %v1111_v63 = vor.u32 %v1110_v42, %v1107_v61  ;;  %v1846_v52 = vshll.u32 %v1809_v36, 16  ;;  %v1121_v59 = vrot.slane %v1119_v32, 4  ;;  %v1124_v62 = vrot.slane %v1122_v35, 5  ;;  %v1096_v17 = vld [vmem:[#allocation2 + $0x44] sm:$0x1]  ;;  %v3813_v42 = vld [vmem:[%s4649_s3 + $0x88] sm:$0xff]  }
 0x123   : > { %3518 = vmatmul.mubr.bf16.gmra.mrb[4].mxu1 %v3045_v5  ;;  %3456 = vmatpush3.bf16.msra.mxu0 %v3797_v9  ;;  %v1823_v60 = vshrl.u32 %v1806_v40, 16  ;;  %v1826_v13 = vshll.u32 %v1806_v40, 16  ;;  %v4250_v6 = vrot.slane %v1114_v37, 5  ;;  %v1142_v7 = vshll.u32 %v1090_v43, 16  ;;  %v2528_v30 = vld [vmem:[#allocation2 + $0x2c] sm:$0x1] }
 0x124   : > { %3537 = vmatprep.mubr.bf16.mxu1 %v3070_v29  ;;  %3457 = vmatprep.subr.bf16.mxu0 %v3799_v58  ;;  %v1156_v9 = vshll.u32 %v1092_v45, 16  ;;  %v1170_v53 = vshll.u32 %v1094_v49, 16  ;;  %v4255_v11 = vrot.slane %v1128_v47, 5  ;;  %v1839_v12 = vrot.slane %v1837_v48, 4  ;;  %v2526_v29 = vld [vmem:[#allocation2 + $0x20] sm:$0x1] }
 0x125   : > { %3528 = vmatpush3.bf16.msra.mxu1 %v3798_v15  ;;  %v1842_v15 = vrot.slane %v1840_v51, 5  ;;  %v4257_v57 = vrot.slane %v1111_v63, 4  ;;  %v4259_v39 = vrot.slane %v1832_v50, 5  ;;  %v1860_v5 = vshll.u32 %v1811_v38, 16  ;;  %v4277_v37 = vld [vmem:[#allocation2 + $0x24] sm:$0x8] }
 0x126   : > { %3529 = vmatprep.subr.bf16.mxu1 %v3800_v44  ;;  %v1125_v34 = vor.u32 %v1124_v62, %v1121_v59  ;;  %v1828_v20 = vrot.slane %v1826_v13, 5  ;;  %v4266_v18 = vrot.slane %v1142_v7, 5  ;;  %v4268_v24 = vrot.slane %v1156_v9, 5  ;;  %v1093_v63 = vld [vmem:[#allocation2 + $0x34] sm:$0xf] }
 0x127   : > { %3458 = vmatpush3.bf16.msra.mxu0 %v3799_v58  ;;  %v4261_v58 = vrot.slane %v1846_v52, 5  ;;  %v1184_v27 = vshll.u32 %v1096_v17, 16  ;;  %v2979_v61 = vcombine.low %v4110_v16, %v4089_v1  ;;  %v1843_v22 = vor.u32 %v1842_v15, %v1839_v12  ;;  %v3814_v16 = vld [vmem:[%s4649_s3 + $0x148] sm:$0xff]   ;;  %v4306_v52 = vld [vmem:[#allocation2 + $0x18] sm:$0x8] }
 0x128   : > { %3459 = vmatprep.subr.bf16.mxu0 %v3801_v2  ;;  %v2980_v32 = vcombine.low %v4127_v41, %v4136_v55  ;;  %v1133_v35 = vshrl.u32 %v1089_v21, 16  ;;  %v1136_v36 = vshll.u32 %v1089_v21, 16  ;;  %v4281_v40 = vrot.slane %v1860_v5, 5  ;;  %v1817_v59 = vld [vmem:[#allocation2 + $0x50] sm:$0x1]  ;;  %v3819_v17 = vld [vmem:[%s4649_s3 + $0x98] sm:$0xff]  }
 0x129   : > { %3530 = vmatpush3.bf16.msra.mxu1 %v3800_v44  ;;  %v3811_v44 = vld [vmem:[%s4649_s3 + $0x140] sm:$0xff]   ;;  %v3071_v1 = vcombine.low %v4104_v14, %v4117_v25  ;;  %v1126_v41 = vrot.slane %v1125_v34, 4  ;;  %v3072_v14 = vcombine.low %v4158_v19, %v4166_v23  ;;  %v3816_v25 = vld [vmem:[%s4649_s3 + $0x90] sm:$0xff]   ;;  %v4301_v47 = vrot.slane %v1184_v27, 5  ;;  %v3820_v21 = vld [vmem:[%s4649_s3 + $0x158] sm:$0xff]  }
 0x12a   : > { %3531 = vmatprep.subr.bf16.mxu1 %v3802_v8  ;;  %v2565_v48 = vshll.u32 %v2528_v30, 16  ;;  %v2119_v51 = vshrl.u32 %v4277_v37, 16  ;;  %v1844_v49 = vrot.slane %v1843_v22, 4  ;;  %v1117_v19 = vsel %vm4290_vm5, %v4257_v57, %v4250_v6  ;;  %v2932_v43 = vld [vmem:[%s4650_s4] ss:$0 sm:$0xff] }
 0x12b   : > { %3460 = vmatpush3.bf16.msra.mxu0 %v3801_v2  ;;  %v1825_v2 = vrot.slane %v1823_v60, 4  ;;  %v1135_v23 = vrot.slane %v1133_v35, 4  ;;  %v1138_v38 = vrot.slane %v1136_v36, 5  ;;  %v1131_v62 = vsel %vm4290_vm5, %v1126_v41, %v4255_v11  ;;  %v3818_v60 = vld [vmem:[%s4649_s3 + $0x150] sm:$0xff]  }
 0x12c   : > { %3461 = vmatprep.subr.bf16.mxu0 %v3803_v26  ;;  %v1164_v6 = vshll.u32 %v1093_v63, 16  ;;  %v2106_v12 = vshrl.u32 %v4306_v52, 16  ;;  %v2981_v15 = vcombine.low %v4155_v10, %v4144_v4  ;;  %v1849_v11 = vsel %vm4290_vm5, %v1844_v49, %v4261_v58  ;;  %v1100_v4 = vld [vmem:[#allocation2 + $0x5c] sm:$0x1] }
 0x12d   : > { %3532 = vmatpush3.bf16.msra.mxu1 %v3802_v8  ;;  %v1874_v8 = vshll.u32 %v1813_v3, 16  ;;  %v1829_v55 = vor.u32 %v1828_v20, %v1825_v2  ;;  %v1161_v3 = vshrl.u32 %v1093_v63, 16  ;;  %v1902_v5 = vshll.u32 %v1817_v59, 16  ;;  %v1810_v20 = vld [vmem:[#allocation2 + $0x28] sm:$0xf] }
 0x12e   : > { %3533 = vmatprep.subr.bf16.mxu1 %v3804_v31  ;;  %v3073_v34 = vcombine.low %v4176_v28, %v4180_v33  ;;  %v1139_v2 = vor.u32 %v1138_v38, %v1135_v23  ;;  %v4331_v10 = vld [vmem:[#allocation2 + $0x5c] sm:$0x1]  ;;  %v1166_v22 = vrot.slane %v1164_v6, 5  ;;  %v1851_v35 = vshrl.u32 %v1810_v20, 16  ;;  %v4352_v23 = vld [vmem:[#allocation2 + $0x68] sm:$0x1] }
 0x12f   : > { %3462 = vmatpush3.bf16.msra.mxu0 %v3803_v26  ;;  %v4270_v26 = vrot.slane %v1170_v53, 5  ;;  %v4294_v45 = vrot.slane %v1874_v8, 5  ;;  %v1830_v13 = vrot.slane %v1829_v55, 4  ;;  %v1095_v53 = vld [vmem:[#allocation2 + $0x40] sm:$0xf]  ;;  %v1163_v33 = vrot.slane %v1161_v3, 4 }
 0x130   : > { %3463 = vmatprep.subr.bf16.mxu0 %v3805_v46  ;;  %v1178_v30 = vshll.u32 %v1095_v53, 16  ;;  %v1854_v36 = vshll.u32 %v1810_v20, 16  ;;  %v4345_v41 = vrot.slane %v1139_v2, 4  ;;  %v1816_v55 = vld [vmem:[#allocation2 + $0x4c] sm:$0xf]  ;;  %v3825_v2 = vld [vmem:[%s4649_s3 + $0xb0] sm:$0xff]  }
 0x131   : > { %3534 = vmatpush3.bf16.msra.mxu1 %v3804_v31  ;;  %v2551_v31 = vshll.u32 %v2526_v29, 16  ;;  %v1098_v29 = vld [vmem:[#allocation2 + $0x50] sm:$0x1]  ;;  %v1835_v58 = vsel %vm4290_vm5, %v1830_v13, %v4259_v39  ;;  %v3821_v39 = vld [vmem:[%s4649_s3 + $0xa0] sm:$0xff]   ;;  %v4357_v13 = vrot.slane %v1851_v35, 4  ;;  %v3824_v3 = vld [vmem:[%s4649_s3 + $0x168] sm:$0xff]  }
 0x132   : > { %3535 = vmatprep.subr.bf16.mxu1 %v3806_v56  ;;  %v3098_v28 = vcombine.low %v1835_v58, %v1849_v11  ;;  %v1097_v6 = vld [vmem:[#allocation2 + $0x4c] sm:$0xf]  ;;  %v1145_v20 = vsel %vm4290_vm5, %v4345_v41, %v4266_v18  ;;  %v2527_v35 = vld [vmem:[#allocation2 + $0x28] sm:$0xf] }
 0x133   : > { %3464 = vmatpush3.bf16.msra.mxu0 %v3805_v46  ;;  %v1091_v46 = vld [vmem:[#allocation2 + $0x28] sm:$0xf]  ;;  %v4304_v50 = vrot.slane %v2551_v31, 5  ;;  %v1814_v31 = vld [vmem:[#allocation2 + $0x40] sm:$0xf] }
 0x134   : > { %3473 = vmatprep.subr.bf16.mxu0 %v3808_v54  ;;  %v1147_v7 = vshrl.u32 %v1091_v46, 16  ;;  %v1150_v9 = vshll.u32 %v1091_v46, 16  ;;  %v1916_v46 = vshll.u32 %v4331_v10, 16  ;;  %v1879_v63 = vshrl.u32 %v1814_v31, 16 }
 0x135   : > { %3536 = vmatpush3.bf16.msra.mxu1 %v3806_v56  ;;  %v1815_v56 = vld [vmem:[#allocation2 + $0x44] sm:$0x1] }
 0x136   : > { %3466 = vmatmul.mubr.bf16.vlgmr.msra.gmra.mrb[8].mxu0 %v2979_v61  ;;  %3545 = vmatprep.subr.bf16.mxu1 %v3811_v44  ;;  %v1888_v57 = vshll.u32 %v1815_v56, 16  ;;  %v1149_v8 = vrot.slane %v1147_v7, 4  ;;  %v1152_v27 = vrot.slane %v1150_v9, 5  ;;  %v1175_v61 = vshrl.u32 %v1095_v53, 16 }
 0x137   : > { %3469 = vmatprep.mubr.bf16.mxu0 %v2980_v32  ;;  %3474 = vmatpush3.bf16.msra.mxu0 %v3808_v54  ;;  %v4318_v54 = vrot.slane %v2565_v48, 5  ;;  %v3822_v32 = vld [vmem:[%s4649_s3 + $0x160] sm:$0xff]   ;;  %v1167_v56 = vor.u32 %v1166_v22, %v1163_v33  ;;  %v4359_v7 = vrot.slane %v1854_v36, 5  ;;  %v1893_v9 = vshrl.u32 %v1816_v55, 16  ;;  %v3826_v36 = vld [vmem:[%s4649_s3 + $0x170] sm:$0xff]  }
 0x138   : > { %3538 = vmatmul.mubr.bf16.vlgmr.msra.gmra.mrb[0].mxu1 %v3071_v1  ;;  %3475 = vmatprep.subr.bf16.mxu0 %v3813_v42  ;;  %v1198_v1 = vshll.u32 %v1098_v29, 16  ;;  %v1153_v38 = vor.u32 %v1152_v27, %v1149_v8  ;;  %v1177_v59 = vrot.slane %v1175_v61, 4  ;;  %v1896_v53 = vshll.u32 %v1816_v55, 16  ;;  %v1820_v33 = vld [vmem:[#allocation2 + $0x64] sm:$0xf] }
 0x139   : > { %3541 = vmatprep.mubr.bf16.mxu1 %v3072_v14  ;;  %3546 = vmatpush3.bf16.msra.mxu1 %v3811_v44  ;;  %v3006_v44 = vcombine.low %v1117_v19, %v1131_v62  ;;  %v4347_v14 = vrot.slane %v1888_v57, 5  ;;  %v1882_v19 = vshll.u32 %v1814_v31, 16  ;;  %v1180_v62 = vrot.slane %v1178_v30, 5 }
 0x13a   : > { %3547 = vmatprep.subr.bf16.mxu1 %v3814_v16  ;;  %v1881_v29 = vrot.slane %v1879_v63, 4  ;;  %v4378_v10 = vrot.slane %v1167_v56, 4  ;;  %v4380_v58 = vrot.slane %v1916_v46, 5  ;;  %v1857_v27 = vor.u32 %v4359_v7, %v4357_v13 }
 0x13b   : > { %3476 = vmatpush3.bf16.msra.mxu0 %v3813_v42  ;;  %v1812_v42 = vld [vmem:[#allocation2 + $0x34] sm:$0xf]  ;;  %v1181_v8 = vor.u32 %v1180_v62, %v1177_v59  ;;  %v1895_v61 = vrot.slane %v1893_v9, 4  ;;  %v1189_v22 = vshrl.u32 %v1097_v6, 16  ;;  %v1192_v30 = vshll.u32 %v1097_v6, 16 }
 0x13c   : > { %3477 = vmatprep.subr.bf16.mxu0 %v3816_v25  ;;  %v1865_v48 = vshrl.u32 %v1812_v42, 16  ;;  %v1868_v49 = vshll.u32 %v1812_v42, 16  ;;  %v1898_v42 = vrot.slane %v1896_v53, 5  ;;  %v1921_v63 = vshrl.u32 %v1820_v33, 16  ;;  %v4390_v6 = vld [vmem:[#allocation2 + $0x1c] sm:$0xf] }
 0x13d   : > { %3548 = vmatpush3.bf16.msra.mxu1 %v3814_v16  ;;  %v1212_v16 = vshll.u32 %v1100_v4, 16  ;;  %v4376_v4 = vrot.slane %v1153_v38, 4  ;;  %v1182_v38 = vrot.slane %v1181_v8, 4  ;;  %v2556_v59 = vshrl.u32 %v2527_v35, 16 }
 0x13e   : > { %3470 = vmatmul.mubr.bf16.gmra.mrb[12].mxu0 %v2981_v15  ;;  %3549 = vmatprep.subr.bf16.mxu1 %v3818_v60  ;;  %v4364_v15 = vrot.slane %v1198_v1, 5  ;;  %v1867_v57 = vrot.slane %v1865_v48, 4  ;;  %v1899_v56 = vor.u32 %v1898_v42, %v1895_v61  ;;  %v2559_v62 = vshll.u32 %v2527_v35, 16  ;;  %v4395_v61 = vld [vmem:[#allocation2 + $0x28] sm:$0xf]  ;;  %v4400_v42 = vld [vmem:[%s4649_s3 + $0x200] sm:$0xff]  }
 0x13f   : > { %3478 = vmatpush3.bf16.msra.mxu0 %v3816_v25  ;;  %3489 = vmatprep.mubr.bf16.mxu0 %v3006_v44  ;;  %v4349_v25 = vrot.slane %v1902_v5, 5  ;;  %v4366_v11 = vrot.slane %v1212_v16, 5  ;;  %v1870_v5 = vrot.slane %v1868_v49, 5  ;;  %v1884_v44 = vrot.slane %v1882_v19, 5 }
 0x140   : > { %3542 = vmatmul.mubr.bf16.gmra.mrb[4].mxu1 %v3073_v34  ;;  %3479 = vmatprep.subr.bf16.mxu0 %v3819_v17  ;;  %v1099_v34 = vld [vmem:[#allocation2 + $0x58] sm:$0xf]  ;;  %v1924_v19 = vshll.u32 %v1820_v33, 16  ;;  %v1191_v13 = vrot.slane %v1189_v22, 4  ;;  %v1194_v7 = vrot.slane %v1192_v30, 5  ;;  %v1923_v8 = vrot.slane %v1921_v63, 4 }
 0x141   : > { %3550 = vmatpush3.bf16.msra.mxu1 %v3818_v60  ;;  %3561 = vmatprep.mubr.bf16.mxu1 %v3098_v28  ;;  %v3823_v60 = vld [vmem:[%s4649_s3 + $0xa8] sm:$0xff]   ;;  %v1818_v28 = vld [vmem:[#allocation2 + $0x58] sm:$0xf]  ;;  %v1203_v31 = vshrl.u32 %v1099_v34, 16  ;;  %v1871_v1 = vor.u32 %v1870_v5, %v1867_v57  ;;  %v1885_v16 = vor.u32 %v1884_v44, %v1881_v29  ;;  %v2558_v33 = vrot.slane %v2556_v59, 4 }
 0x142   : > { %3551 = vmatprep.subr.bf16.mxu1 %v3820_v21  ;;  %v1907_v48 = vshrl.u32 %v1818_v28, 16  ;;  %v1910_v49 = vshll.u32 %v1818_v28, 16  ;;  %v1900_v28 = vrot.slane %v1899_v56, 4  ;;  %v2561_v22 = vrot.slane %v2559_v62, 5 }
 0x143   : > { %3480 = vmatpush3.bf16.msra.mxu0 %v3819_v17  ;;  %v1930_v17 = vshll.u32 %v4352_v23, 16  ;;  %v1205_v9 = vrot.slane %v1203_v31, 4  ;;  %v1872_v57 = vrot.slane %v1871_v1, 4  ;;  %v1886_v5 = vrot.slane %v1885_v16, 4 }
 0x144   : > { %3481 = vmatprep.subr.bf16.mxu0 %v3821_v39  ;;  %v2111_v30 = vshrl.u32 %v4390_v6, 16  ;;  %v1858_v31 = vrot.slane %v1857_v27, 4  ;;  %v1187_v16 = vsel %vm4290_vm5, %v1182_v38, %v4301_v47  ;;  %v1905_v27 = vsel %vm4290_vm5, %v1900_v28, %v4349_v25  ;;  %v3832_v25 = vld [vmem:[%s4649_s3 + $0x188] sm:$0xff]   ;;  %v2529_v28 = vld [vmem:[#allocation2 + $0x34] sm:$0xf] }
 0x145   : > { %3552 = vmatpush3.bf16.msra.mxu1 %v3820_v21  ;;  %v2525_v21 = vld [vmem:[#allocation2 + $0x1c] sm:$0xf]  ;;  %v1877_v18 = vsel %vm4290_vm5, %v1872_v57, %v4294_v45  ;;  %v1891_v47 = vsel %vm4290_vm5, %v1886_v5, %v4347_v14  ;;  %v3834_v57 = vld [vmem:[%s4649_s3 + $0x190] sm:$0xff]  }
 0x146   : > { %3553 = vmatprep.subr.bf16.mxu1 %v3822_v32  ;;  %v2542_v55 = vshrl.u32 %v2525_v21, 16  ;;  %v2545_v46 = vshll.u32 %v2525_v21, 16  ;;  %v1912_v21 = vrot.slane %v1910_v49, 5  ;;  %v3100_v56 = vcombine.low %v1891_v47, %v1905_v27 }
 0x147   : > { %3482 = vmatpush3.bf16.msra.mxu0 %v3821_v39  ;;  %v1206_v39 = vshll.u32 %v1099_v34, 16  ;;  %v1909_v34 = vrot.slane %v1907_v48, 4  ;;  %v1863_v48 = vsel %vm4290_vm5, %v1858_v31, %v4281_v40  ;;  %v1932_v40 = vrot.slane %v1930_v17, 5 }
 0x148   : > { %3483 = vmatprep.subr.bf16.mxu0 %v3823_v60  ;;  %v2544_v29 = vrot.slane %v2542_v55, 4  ;;  %v2547_v44 = vrot.slane %v2545_v46, 5  ;;  %v2113_v46 = vrot.slane %v2111_v30, 7  ;;  %v3099_v14 = vcombine.low %v1863_v48, %v1877_v18  ;;  %v3838_v30 = vld [vmem:[%s4649_s3 + $0x1a0] sm:$0xff]   ;;  %v3840_v18 = vld [vmem:[%s4649_s3 + $0x1a8] sm:$0xff]  }
 0x149   : > { %3554 = vmatpush3.bf16.msra.mxu1 %v3822_v32  ;;  %v3827_v32 = vld [vmem:[%s4649_s3 + $0xb8] sm:$0xff]   ;;  %v1208_v53 = vrot.slane %v1206_v39, 5  ;;  %v1195_v39 = vor.u32 %v1194_v7, %v1191_v13  ;;  %v1913_v41 = vor.u32 %v1912_v21, %v1909_v34  ;;  %v4452_v13 = vld [vmem:[%s4649_s3 + $0x210] sm:$0xff]   ;;  %v2531_v21 = vld [vmem:[#allocation2 + $0x40] sm:$0xf]  ;;  %v2573_v31 = vshll.u32 %v2529_v28, 16 }
 0x14a   : > { %3555 = vmatprep.subr.bf16.mxu1 %v3824_v3  ;;  %v2548_v55 = vor.u32 %v2547_v44, %v2544_v29  ;;  %v2099_v48 = vld [vmem:[#allocation2 + $0x54] sm:$0x8] }
 0x14b   : > { %3484 = vmatpush3.bf16.msra.mxu0 %v3823_v60  ;;  %v3828_v60 = vld [vmem:[%s4649_s3 + $0x178] sm:$0xff]   ;;  %v1209_v35 = vor.u32 %v1208_v53, %v1205_v9  ;;  %v1196_v49 = vrot.slane %v1195_v39, 4  ;;  %v1914_v59 = vrot.slane %v1913_v41, 4  ;;  %v3110_v9 = vrot.slane %v2106_v12, 11  ;;  %v4508_v39 = vld [vmem:[%s4649_s3 + $0x228] sm:$0xff]  }
 0x14c   : > { %3485 = vmatprep.subr.bf16.mxu0 %v3825_v2  ;;  %v3111_v12 = vrot.slane %v2119_v51, 11  ;;  %v4486_v51 = vld [vmem:[%s4649_s3 + $0x218] sm:$0xff]   ;;  %v2532_v41 = vld [vmem:[#allocation2 + $0x44] sm:$0x1]  ;;  %v2575_v27 = vrot.slane %v2573_v31, 5 }
 0x14d   : > { %3556 = vmatpush3.bf16.msra.mxu1 %v3824_v3  ;;  %v1926_v3 = vrot.slane %v1924_v19, 5  ;;  %v1210_v63 = vrot.slane %v1209_v35, 4  ;;  %v2549_v19 = vrot.slane %v2548_v55, 4  ;;  %v1201_v23 = vsel %vm4290_vm5, %v1196_v49, %v4364_v15  ;;  %v4510_v35 = vld [vmem:[#allocation2 + $0x40] sm:$0xf] }
 0x14e   : > { %3557 = vmatprep.subr.bf16.mxu1 %v3826_v36  ;;  %v1919_v15 = vsel %vm4290_vm5, %v1914_v59, %v4380_v58  ;;  %v2095_v55 = vld [vmem:[#allocation2 + $0x3c] sm:$0x8] }
 0x14f   : > { %3486 = vmatpush3.bf16.msra.mxu0 %v3825_v2  ;;  %v1159_v2 = vsel %vm4290_vm5, %v4376_v4, %v4268_v24  ;;  %v2124_v24 = vshrl.u32 %v4395_v61, 16  ;;  %v1173_v4 = vsel %vm4290_vm5, %v4378_v10, %v4270_v26  ;;  %v4436_v26 = vld [vmem:[%s4649_s3 + $0x208] sm:$0xff]   ;;  %v2562_v10 = vor.u32 %v2561_v22, %v2558_v33 }
 0x150   : > { %3487 = vmatprep.subr.bf16.mxu0 %v3827_v32  ;;  %v3007_v1 = vcombine.low %v1145_v20, %v1159_v2  ;;  %v1927_v20 = vor.u32 %v1926_v3, %v1923_v8  ;;  %v3008_v45 = vcombine.low %v1173_v4, %v1187_v16  ;;  %v1215_v17 = vsel %vm4290_vm5, %v1210_v63, %v4366_v11  ;;  %v4498_v3 = vld [vmem:[%s4649_s3 + $0x220] sm:$0xff]   ;;  %v4514_v4 = vld [vmem:[#allocation2 + $0x58] sm:$0xf] }
 0x151   : > { %3558 = vmatpush3.bf16.msra.mxu1 %v3826_v36  ;;  %v3830_v36 = vld [vmem:[%s4649_s3 + $0x180] sm:$0xff]   ;;  %v2126_v38 = vrot.slane %v2124_v24, 7  ;;  %v2563_v7 = vrot.slane %v2562_v10, 4  ;;  %v2554_v52 = vsel %vm4290_vm5, %v2549_v19, %v4304_v50  ;;  %v3009_v29 = vcombine.low %v1201_v23, %v1215_v17  ;;  %v4512_v24 = vld [vmem:[#allocation2 + $0x4c] sm:$0xf] }
 0x152   : > { %3559 = vmatprep.subr.bf16.mxu1 %v3828_v60  ;;  %v1928_v62 = vrot.slane %v1927_v20, 4  ;;  %v2584_v33 = vshrl.u32 %v2531_v21, 16  ;;  %v2587_v22 = vshll.u32 %v2531_v21, 16  ;;  %v2570_v2 = vshrl.u32 %v2529_v28, 16  ;;  %v4519_v20 = vld [vmem:[#allocation2 + $0x34] sm:$0xf] }
 0x153   : > { %3488 = vmatpush3.bf16.msra.mxu0 %v3827_v32  ;;  %v2114_v32 = vshll.u32 %v4390_v6, 16  ;;  %v2568_v50 = vsel %vm4290_vm5, %v2563_v7, %v4318_v54  ;;  %v3836_v54 = vld [vmem:[%s4649_s3 + $0x198] sm:$0xff]   ;;  %v2150_v10 = vshrl.u32 %v4510_v35, 16  ;;  %v2163_v49 = vshrl.u32 %v4512_v24, 16  ;;  %v4542_v23 = vld [vmem:[#allocation2 + $0x70] sm:$0xf] }
 0x154   : > { %3617 = vmatprep.subr.bf16.mxu0 %v4400_v42  ;;  %v1933_v11 = vsel %vm4290_vm5, %v1928_v62, %v1932_v40  ;;  %v3190_v58 = vcombine.low %v2554_v52, %v2568_v50  ;;  %v2586_v16 = vrot.slane %v2584_v33, 4  ;;  %v2572_v47 = vrot.slane %v2570_v2, 4  ;;  %v4539_v40 = vld [vmem:[%s4649_s3 + $0x238] sm:$0xff]   ;;  %v2103_v33 = vld [vmem:[#allocation2 + $0x6c] sm:$0x8] }
 0x155   : > { %3560 = vmatpush3.bf16.msra.mxu1 %v3828_v60  ;;  %v2116_v53 = vor.u32 %v2114_v32, %v2113_v46  ;;  %v2127_v60 = vshll.u32 %v4395_v61, 16  ;;  %v3101_v44 = vcombine.low %v1919_v15, %v1933_v11  ;;  %v2097_v46 = vld [vmem:[#allocation2 + $0x48] sm:$0x8]  ;;  %v2176_v63 = vshrl.u32 %v4514_v4, 16  ;;  %v3842_v32 = vld [vmem:[%s4649_s3 + $0x1b0] sm:$0xff]  }
 0x156   : > { %3490 = vmatmul.mubr.bf16.vlgmr.msra.gmra.mrb[8].mxu0 %v3007_v1  ;;  %3569 = vmatprep.subr.bf16.mxu1 %v3830_v36  ;;  %v2530_v1 = vld [vmem:[#allocation2 + $0x38] sm:$0x1]  ;;  %v2137_v19 = vshrl.u32 %v4519_v20, 16  ;;  %v2145_v59 = vshrl.u32 %v2095_v55, 16  ;;  %v2158_v62 = vshrl.u32 %v2097_v46, 16  ;;  %v2576_v7 = vor.u32 %v2575_v27, %v2572_v47 }
 0x157   : > { %3493 = vmatprep.mubr.bf16.mxu0 %v3008_v45  ;;  %3618 = vmatpush3.bf16.msra.mxu0 %v4400_v42  ;;  %v2129_v5 = vor.u32 %v2127_v60, %v2126_v38  ;;  %v2117_v37 = vsel %vm4085_vm2, %v3110_v9, %v2116_v53  ;;  %v4527_v45 = vld [vmem:[%s4649_s3 + $0x230] sm:$0xff]   ;;  %v2579_v38 = vshll.u32 %v2530_v1, 16  ;;  %v2152_v9 = vrot.slane %v2150_v10, 7 }
 0x158   : > { %3562 = vmatmul.mubr.bf16.vlgmr.msra.gmra.mrb[0].mxu1 %v3099_v14  ;;  %3619 = vmatprep.subr.bf16.mxu0 %v4436_v26  ;;  %v2153_v53 = vshll.u32 %v4510_v35, 16  ;;  %v2171_v60 = vshrl.u32 %v2099_v48, 16  ;;  %v2165_v17 = vrot.slane %v2163_v49, 7  ;;  %v2178_v52 = vrot.slane %v2176_v63, 7 }
 0x159   : > { %3565 = vmatprep.mubr.bf16.mxu1 %v3100_v56  ;;  %3570 = vmatpush3.bf16.msra.mxu1 %v3830_v36  ;;  %v2130_v34 = vsel %vm4085_vm2, %v3111_v12, %v2129_v5  ;;  %v2589_v36 = vrot.slane %v2587_v22, 5  ;;  %v2093_v56 = vld [vmem:[#allocation2 + $0x30] sm:$0x8]  ;;  %v2179_v12 = vshll.u32 %v4514_v4, 16  ;;  %v4547_v5 = vld [vmem:[#allocation2 + $0x64] sm:$0xf] }
 0x15a   : > { %3571 = vmatprep.subr.bf16.mxu1 %v3832_v25  ;;  %v3134_v8 = vcombine.low %v2117_v37, %v2130_v34  ;;  %v2139_v50 = vrot.slane %v2137_v19, 7  ;;  %v3844_v37 = vld [vmem:[%s4649_s3 + $0x1b8] sm:$0xff]   ;;  %v2101_v34 = vld [vmem:[#allocation2 + $0x60] sm:$0x8]  ;;  %v2577_v21 = vrot.slane %v2576_v7, 4  ;;  %v2155_v28 = vor.u32 %v2153_v53, %v2152_v9 }
 0x15b   : > { %3620 = vmatpush3.bf16.msra.mxu0 %v4436_v26  ;;  %v2590_v14 = vor.u32 %v2589_v36, %v2586_v16  ;;  %v2189_v22 = vshrl.u32 %v4547_v5, 16  ;;  %v3115_v31 = vrot.slane %v2171_v60, 11  ;;  %v2181_v1 = vor.u32 %v2179_v12, %v2178_v52  ;;  %v3847_v60 = vld [vmem:[%s4649_s3 + $0x1d0] sm:$0xff]   ;;  %v3849_v12 = vld [vmem:[%s4649_s3 + $0x1d8] sm:$0xff]  }
 0x15c   : > { %3621 = vmatprep.subr.bf16.mxu0 %v4452_v13  ;;  %v2197_v47 = vshrl.u32 %v2103_v33, 16  ;;  %v2205_v10 = vshll.u32 %v4542_v23, 16  ;;  %v2192_v63 = vshll.u32 %v4547_v5, 16  ;;  %v2534_v33 = vld [vmem:[#allocation2 + $0x50] sm:$0x1] }
 0x15d   : > { %3572 = vmatpush3.bf16.msra.mxu1 %v3832_v25  ;;  %v2593_v25 = vshll.u32 %v2532_v41, 16  ;;  %v2591_v15 = vrot.slane %v2590_v14, 4  ;;  %v2184_v41 = vshrl.u32 %v2101_v34, 16  ;;  %v2191_v49 = vrot.slane %v2189_v22, 7  ;;  %v3853_v34 = vld [vmem:[%s4649_s3 + $0x1f8] sm:$0xff]  }
 0x15e   : > { %3494 = vmatmul.mubr.bf16.gmra.mrb[12].mxu0 %v3009_v29  ;;  %3573 = vmatprep.subr.bf16.mxu1 %v3834_v57  ;;  %v2132_v29 = vshrl.u32 %v2093_v56, 16  ;;  %v2182_v19 = vsel %vm4085_vm2, %v3115_v31, %v2181_v1  ;;  %v3846_v56 = vld [vmem:[%s4649_s3 + $0x1c8] sm:$0xff]   ;;  %v3117_v9 = vrot.slane %v2197_v47, 11  ;;  %v2536_v22 = vld [vmem:[#allocation2 + $0x5c] sm:$0x1] }
 0x15f   : > { %3622 = vmatpush3.bf16.msra.mxu0 %v4452_v13  ;;  %3633 = vmatprep.mubr.bf16.mxu0 %v3190_v58  ;;  %v2595_v11 = vrot.slane %v2593_v25, 5  ;;  %v2581_v58 = vrot.slane %v2579_v38, 5  ;;  %v2194_v7 = vor.u32 %v2192_v63, %v2191_v49  ;;  %v2621_v1 = vshll.u32 %v2536_v22, 16 }
 0x160   : > { %3566 = vmatmul.mubr.bf16.gmra.mrb[4].mxu1 %v3101_v44  ;;  %3623 = vmatprep.subr.bf16.mxu0 %v4486_v51  ;;  %v3113_v44 = vrot.slane %v2145_v59, 11  ;;  %v3112_v36 = vrot.slane %v2132_v29, 11  ;;  %v3116_v59 = vrot.slane %v2184_v41, 11  ;;  %v2533_v29 = vld [vmem:[#allocation2 + $0x4c] sm:$0xf] }
 0x161   : > { %3574 = vmatpush3.bf16.msra.mxu1 %v3834_v57  ;;  %3585 = vmatprep.mubr.bf16.mxu1 %v3134_v8  ;;  %v2166_v57 = vshll.u32 %v4512_v24, 16  ;;  %v2140_v8 = vshll.u32 %v4519_v20, 16  ;;  %v2596_v16 = vsel %vm4290_vm5, %v2591_v15, %v2595_v11  ;;  %v2582_v46 = vsel %vm4290_vm5, %v2577_v21, %v2581_v58  ;;  %v3850_v11 = vld [vmem:[%s4649_s3 + $0x1e0] sm:$0xff]  }
 0x162   : > { %3575 = vmatprep.subr.bf16.mxu1 %v3836_v54  ;;  %v2156_v48 = vsel %vm4085_vm2, %v3113_v44, %v2155_v28  ;;  %v3191_v14 = vcombine.low %v2582_v46, %v2596_v16  ;;  %v3162_v15 = vcombine.low %v4390_v6, %v4395_v61  ;;  %v3852_v6 = vld [vmem:[%s4649_s3 + $0x1f0] sm:$0xff]   ;;  %v2598_v61 = vshrl.u32 %v2533_v29, 16 }
 0x163   : > { %3624 = vmatpush3.bf16.msra.mxu0 %v4486_v51  ;;  %v2168_v2 = vor.u32 %v2166_v57, %v2165_v17  ;;  %v2142_v55 = vor.u32 %v2140_v8, %v2139_v50  ;;  %v2195_v17 = vsel %vm4085_vm2, %v3116_v59, %v2194_v7  ;;  %v2535_v50 = vld [vmem:[#allocation2 + $0x58] sm:$0xf]  ;;  %v3163_v16 = vcombine.low %v4519_v20, %v4510_v35  ;;  %v2537_v20 = vld [vmem:[#allocation2 + $0x64] sm:$0xf] }
 0x164   : > { %3625 = vmatprep.subr.bf16.mxu0 %v4498_v3  ;;  %v2612_v58 = vshrl.u32 %v2535_v50, 16  ;;  %v2615_v44 = vshll.u32 %v2535_v50, 16  ;;  %v2623_v47 = vrot.slane %v2621_v1, 5  ;;  %v2629_v46 = vshll.u32 %v2537_v20, 16 }
 0x165   : > { %3576 = vmatpush3.bf16.msra.mxu1 %v3836_v54  ;;  %v2202_v54 = vshrl.u32 %v4542_v23, 16 }
 0x166   : > { %3577 = vmatprep.subr.bf16.mxu1 %v3838_v30  ;;  %v2614_v8 = vrot.slane %v2612_v58, 4  ;;  %v2617_v28 = vrot.slane %v2615_v44, 5 }
 0x167   : > { %3626 = vmatpush3.bf16.msra.mxu0 %v4498_v3  ;;  %v2204_v27 = vrot.slane %v2202_v54, 7  ;;  %v2600_v54 = vrot.slane %v2598_v61, 4 }
 0x168   : > { %3627 = vmatprep.subr.bf16.mxu0 %v4508_v39  ;;  %v2618_v31 = vor.u32 %v2617_v28, %v2614_v8 }
 0x169   : > { %3578 = vmatpush3.bf16.msra.mxu1 %v3838_v30  ;;  %v3114_v30 = vrot.slane %v2158_v62, 11  ;;  %v2207_v53 = vor.u32 %v2205_v10, %v2204_v27  ;;  %v2539_v10 = vld [vmem:[#allocation2 + $0x70] sm:$0xf] }
 0x16a   : > { %3579 = vmatprep.subr.bf16.mxu1 %v3840_v18  ;;  %v2619_v41 = vrot.slane %v2618_v31, 4  ;;  %v2643_v49 = vshll.u32 %v2539_v10, 16 }
 0x16b   : > { %3628 = vmatpush3.bf16.msra.mxu0 %v4508_v39  ;;  %v2169_v25 = vsel %vm4085_vm2, %v3114_v30, %v2168_v2  ;;  %v2208_v57 = vsel %vm4085_vm2, %v3117_v9, %v2207_v53  ;;  %v2607_v2 = vshll.u32 %v2534_v33, 16 }
 0x16c   : > { %3629 = vmatprep.subr.bf16.mxu0 %v4527_v45  ;;  %v3136_v62 = vcombine.low %v2169_v25, %v2182_v19  ;;  %v3137_v52 = vcombine.low %v2195_v17, %v2208_v57  ;;  %v2624_v35 = vsel %vm4290_vm5, %v2619_v41, %v2623_v47  ;;  %v2645_v63 = vrot.slane %v2643_v49, 5  ;;  %v2540_v25 = vld [vmem:[#allocation2 + $0x74] sm:$0x1] }
 0x16d   : > { %3580 = vmatpush3.bf16.msra.mxu1 %v3840_v18  ;;  %v3845_v18 = vld [vmem:[%s4649_s3 + $0x1c0] sm:$0xff]  }
 0x16e   : > { %3581 = vmatprep.subr.bf16.mxu1 %v3842_v32 }
 0x16f   : > { %3630 = vmatpush3.bf16.msra.mxu0 %v4527_v45 }
 0x170   : > { %3631 = vmatprep.subr.bf16.mxu0 %v4539_v40 }
 0x171   : > { %3582 = vmatpush3.bf16.msra.mxu1 %v3842_v32  ;;  %v2143_v32 = vsel %vm4085_vm2, %v3112_v36, %v2142_v55  ;;  %v3164_v36 = vcombine.low %v4512_v24, %v4514_v4  ;;  %v3165_v24 = vcombine.low %v4547_v5, %v4542_v23  ;;  %v2631_v23 = vrot.slane %v2629_v46, 5 }
 0x172   : > { %3583 = vmatprep.subr.bf16.mxu1 %v3844_v37  ;;  %v3135_v38 = vcombine.low %v2143_v32, %v2156_v48  ;;  %v2640_v48 = vshrl.u32 %v2539_v10, 16 }
 0x173   : > { %3632 = vmatpush3.bf16.msra.mxu0 %v4539_v40 }
 0x174   : > { %v2642_v5 = vrot.slane %v2640_v48, 4 }
 0x175   : > { %3584 = vmatpush3.bf16.msra.mxu1 %v3844_v37  ;;  %v2601_v37 = vshll.u32 %v2533_v29, 16 }
 0x176   : > { %3634 = vmatmul.mubr.bf16.vlgmr.msra.gmra.mrb[16].mxu0 %v3191_v14  ;;  %3593 = vmatprep.subr.bf16.mxu1 %v3845_v18  ;;  %v2538_v14 = vld [vmem:[#allocation2 + $0x68] sm:$0x1]  ;;  %v2646_v32 = vor.u32 %v2645_v63, %v2642_v5 }
 0x177   : > { %v2603_v21 = vrot.slane %v2601_v37, 5  ;;  %v2635_v19 = vshll.u32 %v2538_v14, 16 }
 0x178   : > { %3586 = vmatmul.mubr.bf16.vlgmr.msra.gmra.mrb[0].mxu1 %v3135_v38  ;;  %v2649_v38 = vshll.u32 %v2540_v25, 16  ;;  %v2647_v59 = vrot.slane %v2646_v32, 4 }
 0x179   : > { %3589 = vmatprep.mubr.bf16.mxu1 %v3136_v62  ;;  %3594 = vmatpush3.bf16.msra.mxu1 %v3845_v18  ;;  %v2604_v30 = vor.u32 %v2603_v21, %v2600_v54  ;;  %v2609_v18 = vrot.slane %v2607_v2, 5 }
 0x17a   : > { %3595 = vmatprep.subr.bf16.mxu1 %v3846_v56  ;;  %v2651_v62 = vrot.slane %v2649_v38, 5 }
 0x17b   : > { %v2605_v55 = vrot.slane %v2604_v30, 4 }
 0x17c   : > { %v2652_v7 = vsel %vm4290_vm5, %v2647_v59, %v2651_v62 }
 0x17d   : > { %3596 = vmatpush3.bf16.msra.mxu1 %v3846_v56  ;;  %v2610_v27 = vsel %vm4290_vm5, %v2605_v55, %v2609_v18  ;;  %v2637_v56 = vrot.slane %v2635_v19, 5 }
 0x17e   : > { %3597 = vmatprep.subr.bf16.mxu1 %v3847_v60  ;;  %v3192_v4 = vcombine.low %v2610_v27, %v2624_v35 }
 0x180   : > { %3590 = vmatmul.mubr.bf16.gmra.mrb[4].mxu1 %v3137_v52 }
 0x181   : > { %3598 = vmatpush3.bf16.msra.mxu1 %v3847_v60  ;;  %3609 = vmatprep.mubr.bf16.mxu1 %v3162_v15 }
 0x182   : > { %3599 = vmatprep.subr.bf16.mxu1 %v3849_v12 }
 0x185   : > { %3600 = vmatpush3.bf16.msra.mxu1 %v3849_v12 }
 0x186   : > { %3601 = vmatprep.subr.bf16.mxu1 %v3850_v11 }
 0x189   : > { %3602 = vmatpush3.bf16.msra.mxu1 %v3850_v11 }
 0x18a   : > { %3603 = vmatprep.subr.bf16.mxu1 %v3851_v0 }
 0x18d   : > { %3604 = vmatpush3.bf16.msra.mxu1 %v3851_v0 }
 0x18e   : > { %3605 = vmatprep.subr.bf16.mxu1 %v3852_v6 }
 0x191   : > { %3606 = vmatpush3.bf16.msra.mxu1 %v3852_v6 }
 0x192   : > { %3607 = vmatprep.subr.bf16.mxu1 %v3853_v34 }
 0x195   : > { %3608 = vmatpush3.bf16.msra.mxu1 %v3853_v34 }
 0x196   : > { %3641 = vmatprep.subr.bf16.mxu1 %v4400_v42 }
 0x198   : > { %3610 = vmatmul.mubr.bf16.vlgmr.msra.gmra.mrb[0].mxu1 %v3163_v16 }
 0x199   : > { %3613 = vmatprep.mubr.bf16.mxu1 %v3164_v36  ;;  %3649 = vmatpush3.bf16.msra.mxu1 %v4400_v42  ;;  %v2626_v42 = vshrl.u32 %v2537_v20, 16 }
 0x19a   : > { %3642 = vmatprep.subr.bf16.mxu1 %v4436_v26 }
 0x19d   : > { %3650 = vmatpush3.bf16.msra.mxu1 %v4436_v26  ;;  %v2628_v26 = vrot.slane %v2626_v42, 4 }
 0x19e   : > { %3643 = vmatprep.subr.bf16.mxu1 %v4452_v13 }
 0x1a0   : > { %3614 = vmatmul.mubr.bf16.gmra.mrb[4].mxu1 %v3165_v24 }
 0x1a1   : > { %3651 = vmatpush3.bf16.msra.mxu1 %v4452_v13  ;;  %3637 = vmatprep.mubr.bf16.mxu1 %v3192_v4  ;;  %v2632_v13 = vor.u32 %v2631_v23, %v2628_v26 }
 0x1a2   : > { %3644 = vmatprep.subr.bf16.mxu1 %v4486_v51 }
 0x1a5   : > { %3652 = vmatpush3.bf16.msra.mxu1 %v4486_v51  ;;  %v2633_v51 = vrot.slane %v2632_v13, 4 }
 0x1a6   : > { %3645 = vmatprep.subr.bf16.mxu1 %v4498_v3 }
 0x1a9   : > { %3653 = vmatpush3.bf16.msra.mxu1 %v4498_v3  ;;  %v2638_v3 = vsel %vm4290_vm5, %v2633_v51, %v2637_v56 }
 0x1aa   : > { %3646 = vmatprep.subr.bf16.mxu1 %v4508_v39  ;;  %v3193_v9 = vcombine.low %v2638_v3, %v2652_v7 }
 0x1ad   : > { %3654 = vmatpush3.bf16.msra.mxu1 %v4508_v39 }
 0x1ae   : > { %3647 = vmatprep.subr.bf16.mxu1 %v4527_v45 }
 0x1b1   : > { %3655 = vmatpush3.bf16.msra.mxu1 %v4527_v45 }
 0x1b2   : > { %3648 = vmatprep.subr.bf16.mxu1 %v4539_v40 }
 0x1b5   : > { %3656 = vmatpush3.bf16.msra.mxu1 %v4539_v40  ;;  %v2941_v40 = vld [vmem:[%s4652_s6] ss:$0 sm:$0xff] }
 0x1b6   : > { %v3661_v50 = vadd.f32 %v2941_v40, %v2932_v43 }
 0x1b8   : > { %3638 = vmatmul.mubr.bf16.vlgmr.msra.gmra.mrb[4].mxu1 %v3193_v9 }
 0x229   : > { %v3491_v39 = vpop.f32.mrb[8].mxu0 }
 0x22a   : > { %v1331_v53 = vpop.f32.mrb[9].mxu0  ;;  %v3658_v6 = vadd.f32 %v3661_v50, %v3491_v39 }
 0x22b   : > { %v3492_v60 = vpop.f32.mrb[10].mxu0  ;;  %v3662_v61 = vadd.f32 %v3661_v50, %v1331_v53 }
 0x22c   : > { %v1334_v17 = vpop.f32.mrb[11].mxu0  ;;  %v3666_v58 = vadd.f32 %v3661_v50, %v3492_v60 }
 0x22d   : > { %v3670_v54 = vadd.f32 %v3661_v50, %v1334_v17 }
 0x231   : > { %v3495_v57 = vpop.f32.mrb[12].mxu0 }
 0x232   : > { %v1347_v52 = vpop.f32.mrb[13].mxu0  ;;  %v3674_v27 = vadd.f32 %v3661_v50, %v3495_v57 }
 0x233   : > { %v3496_v12 = vpop.f32.mrb[14].mxu0  ;;  %v3677_v35 = vadd.f32 %v3661_v50, %v1347_v52 }
 0x234   : > { %v1350_v45 = vpop.f32.mrb[15].mxu0  ;;  %v3680_v4 = vadd.f32 %v3661_v50, %v3496_v12 }
 0x235   : > { %v3683_v42 = vadd.f32 %v3661_v50, %v1350_v45 }
 0x249   : > { %v3635_v15 = vpop.f32.mrb[16].mxu0 }
 0x24a   : > { %v2768_v11 = vpop.f32.mrb[17].mxu0 }
 0x24b   : > { %v3636_v0 = vpop.f32.mrb[18].mxu0 }
 0x24c   : > { %v2771_v29 = vpop.f32.mrb[19].mxu0 }
 0x26b   : > { %v3611_v37 = vpop.f32.mrb[0].mxu1 }
 0x26c   : > { %v3659_v44 = vadd.f32 %v3658_v6, %v3611_v37  ;;  %v2486_v34 = vpop.f32.mrb[1].mxu1 }
 0x26d   : > { %v3663_v21 = vadd.f32 %v3662_v61, %v2486_v34  ;;  %v3612_v8 = vpop.f32.mrb[2].mxu1 }
 0x26e   : > { %v3660_v28 = vadd.f32 %v3659_v44, %v3635_v15  ;;  %v3667_v33 = vadd.f32 %v3666_v58, %v3612_v8  ;;  %v2489_v22 = vpop.f32.mrb[3].mxu1 }
 0x26f   : > { %v3664_v30 = vadd.f32 %v3663_v21, %v2768_v11  ;;  %v3671_v2 = vadd.f32 %v3670_v54, %v2489_v22 }
 0x270   : > { %v3668_v31 = vadd.f32 %v3667_v33, %v3636_v0  ;;  %v2809_v16 = vmax.f32 %v3660_v28, 0.0 }
 0x271   : > { %v3672_v1 = vadd.f32 %v3671_v2, %v2771_v29  ;;  %v2807_v55 = vmax.f32 %v3664_v30, 0.0 }
 0x272   : > { %v2810_v36 = vmax.f32 %v3668_v31, 0.0 }
 0x273   : > { %v2808_v18 = vmax.f32 %v3672_v1, 0.0 }
 0x274   : > { %v3230_v41 = vpack.c.bf16 %v2810_v36, %v2809_v16 }
 0x275   : > { %v3225_v47 = vpack.c.bf16 %v2808_v18, %v2807_v55 }
 0x276   : > { %3242 = vst [vmem:[%s278_s11 + $0x8] sm:$0xff] %v3230_v41  }
 0x277   : > { %3226 = vst [vmem:[%s278_s11] sm:$0xff] %v3225_v47  }
 0x28b   : > { %v3639_v24 = vpop.f32.mrb[4].mxu1 }
 0x28c   : > { %v3675_v20 = vadd.f32 %v3674_v27, %v3639_v24  ;;  %v2784_v10 = vpop.f32.mrb[5].mxu1 }
 0x28d   : > { %v3678_v46 = vadd.f32 %v3677_v35, %v2784_v10  ;;  %v3640_v48 = vpop.f32.mrb[6].mxu1 }
 0x28e   : > { %v3681_v49 = vadd.f32 %v3680_v4, %v3640_v48  ;;  %v2787_v26 = vpop.f32.mrb[7].mxu1  ;;  %v2813_v5 = vmax.f32 %v3675_v20, 0.0 }
 0x28f   : > { %v3684_v23 = vadd.f32 %v3683_v42, %v2787_v26  ;;  %v2811_v14 = vmax.f32 %v3678_v46, 0.0 }
 0x290   : > { %v2814_v63 = vmax.f32 %v3681_v49, 0.0 }
 0x291   : > { %v2812_v25 = vmax.f32 %v3684_v23, 0.0 }
 0x292   : > { %v3240_v13 = vpack.c.bf16 %v2814_v63, %v2813_v5 }
 0x293   : > { %v3235_v19 = vpack.c.bf16 %v2812_v25, %v2811_v14 }
 0x294   : > { %3244 = vst [vmem:[%s278_s11 + $0x18] sm:$0xff] %v3240_v13  }
 0x295   : > { %3243 = vst [vmem:[%s278_s11 + $0x10] sm:$0xff] %v3235_v19  }
 0x296 PF: > { %s17_s24 = sadd.s32 1, %s3863_s24  }
 0x297   : > { %p14_p4 = scmp.ge.s32.totalorder %s17_s24, 4  }
 0x299   :  { %16 = sbr.rel (!%p14_p4) target bundleno = 1 (0x1), region = 89 }

</bundles_post_ra>
